<compile_context>
chip_gen: v6e
topology: v6e:2x2x1
jax: 0.10.0
libtpu: 0.0.40
codegen_flags: <defaults>
</compile_context>

<pallas_src>
import jax
import jax.numpy as jnp
from jax.experimental import pallas as pl
from jax.experimental.pallas import tpu as pltpu

NEG_SLOPE = 0.01  # F.leaky_relu default negative_slope
LANE = 128


def _leaky_relu(x):
    return jnp.where(x > 0, x, NEG_SLOPE * x)


def _default_tile_n():
    """W3 tile width: 1024 on v5e (16 MiB scoped VMEM), 2048 on v6e/v7x."""
    try:
        kind = jax.devices()[0].device_kind.lower()
    except Exception:
        return 1024
    if "v6" in kind or "v7" in kind:
        return 2048
    return 1024


# ---------------------------------------------------------------------------
# Stage 1: fc1 -> leaky_relu -> fc2 -> leaky_relu   (small, fully resident)
# ---------------------------------------------------------------------------
def mlp12_kernel(x_ref, w1_ref, b1_ref, w2_ref, b2_ref, h2_ref):
    h1 = _leaky_relu(
        jnp.dot(x_ref[...], w1_ref[...], preferred_element_type=jnp.float32)
        + b1_ref[...]
    )
    h2 = _leaky_relu(
        jnp.dot(h1, w2_ref[...], preferred_element_type=jnp.float32) + b2_ref[...]
    )
    h2_ref[...] = h2.astype(h2_ref.dtype)


# ---------------------------------------------------------------------------
# Stage 2: fc3 (1024 -> 3*n_pts), tiled over output columns, bf16 W3 streaming
# ---------------------------------------------------------------------------
def fc3_kernel(h2_ref, w3_ref, b3_ref, o_ref):
    # bf16 x bf16 MXU matmul with f32 accumulation; no in-kernel upcast of W3.
    o = jnp.dot(h2_ref[...], w3_ref[...], preferred_element_type=jnp.float32)
    o_ref[...] = (o + b3_ref[...]).astype(o_ref.dtype)


def prepare_decoder_params(params, n_pts, *, tile_n=None, w3_dtype=jnp.bfloat16):
    """One-time prep: cast W3 to bf16 and pad W3/b3 to the tile-aligned width.

    Done eagerly here (not per forward call) so the per-call path never re-reads
    the f32 W3 from HBM.
    """
    w1, b1, w2, b2, w3, b3 = params
    out_dim = 3 * n_pts
    if tile_n is None:
        tile_n = _default_tile_n()

    tn = min(tile_n, LANE * pl.cdiv(out_dim, LANE))
    out_padded = tn * pl.cdiv(out_dim, tn)
    pad = out_padded - out_dim

    w3q = w3.astype(w3_dtype)
    b3p = b3.astype(jnp.float32)
    if pad:
        # Zero-padded columns produce exact zeros and are sliced off in the wrapper.
        w3q = jnp.pad(w3q, ((0, 0), (0, pad)))
        b3p = jnp.pad(b3p, ((0, 0), (0, pad)))
    w3q = jax.block_until_ready(w3q)
    b3p = jax.block_until_ready(b3p)

    return {
        "w1": w1, "b1": b1, "w2": w2, "b2": b2,
        "w3q": w3q, "b3p": b3p,
        "tn": int(tn), "out_padded": int(out_padded),
        "out_dim": int(out_dim), "n_pts": int(n_pts),
    }


def point_cloud_decoder(embedding, prep):
    """embedding: (B, emb_dim) f32 -> (B, n_pts, 3) f32."""
    B, emb_dim = embedding.shape
    tn, out_padded, out_dim = prep["tn"], prep["out_padded"], prep["out_dim"]

    # ---- Stage 1: fully-resident small MLP, h2 emitted in bf16 ----
    h2 = pl.pallas_call(
        mlp12_kernel,
        out_shape=jax.ShapeDtypeStruct((B, 1024), jnp.bfloat16),
    )(embedding, prep["w1"], prep["b1"], prep["w2"], prep["b2"])

    # ---- Stage 2: tiled fc3, W3 streamed from HBM in bf16 ----
    grid = (out_padded // tn,)
    const = lambda j: (0, 0)
    tiled = lambda j: (0, j)

    flops = 2 * B * 1024 * out_padded
    bytes_accessed = (
        B * 1024 * 2                                     # h2 (bf16, resident)
        + prep["w3q"].size * prep["w3q"].dtype.itemsize  # W3 stream
        + prep["b3p"].size * 4
        + B * out_padded * 4                             # output writeback
    )

    out_flat = pl.pallas_call(
        fc3_kernel,
        out_shape=jax.ShapeDtypeStruct((B, out_padded), jnp.float32),
        grid=grid,
        in_specs=[
            pl.BlockSpec((B, 1024), const),   # h2      (resident, bf16)
            pl.BlockSpec((1024, tn), tiled),  # W3 tile (streamed, bf16)
            pl.BlockSpec((1, tn), tiled),     # b3 tile
        ],
        out_specs=pl.BlockSpec((B, tn), tiled),
        compiler_params=pltpu.CompilerParams(
            dimension_semantics=("parallel",),
        ),
        cost_estimate=pl.CostEstimate(
            flops=flops, transcendentals=0, bytes_accessed=bytes_accessed
        ),
    )(h2, prep["w3q"], prep["b3p"])

    return out_flat[:, :out_dim].reshape(B, -1, 3)


def init_params(key, emb_dim, n_pts):
    ks = jax.random.split(key, 6)
    # Deterministic synthetic init (PyTorch Linear-shaped params, stored (in, out)).
    w1 = jax.random.normal(ks[0], (emb_dim, 512), jnp.float32) * 0.05
    b1 = jax.random.normal(ks[1], (1, 512), jnp.float32) * 0.05
    w2 = jax.random.normal(ks[2], (512, 1024), jnp.float32) * 0.05
    b2 = jax.random.normal(ks[3], (1, 1024), jnp.float32) * 0.05
    w3 = jax.random.normal(ks[4], (1024, 3 * n_pts), jnp.float32) * 0.05
    b3 = jax.random.normal(ks[5], (1, 3 * n_pts), jnp.float32) * 0.05
    return (w1, b1, w2, b2, w3, b3)


def reference(embedding, params, *, w3_dtype=jnp.bfloat16):
    # Pure-JAX reference matching the kernel's numerics: f32 layers 1-2,
    # h2 and W3 cast to bf16 for fc3 with f32 accumulation.
    w1, b1, w2, b2, w3, b3 = params
    h = jax.nn.leaky_relu(embedding @ w1 + b1, NEG_SLOPE)
    h = jax.nn.leaky_relu(h @ w2 + b2, NEG_SLOPE)
    o = jnp.dot(h.astype(jnp.bfloat16), w3.astype(w3_dtype),
                preferred_element_type=jnp.float32) + b3
    return o.reshape(embedding.shape[0], -1, 3)


if __name__ == "__main__":
    key = jax.random.PRNGKey(0)
    k_x, k_p1, k_p2 = jax.random.split(key, 3)

    # Case 1: tiny (out_dim=192 -> padded to 256, grid=(1,)).
    B, emb_dim, n_pts = 2, 32, 64
    embedding = jax.random.normal(k_x, (B, emb_dim), jnp.float32)
    params = init_params(k_p1, emb_dim, n_pts)
    prep = prepare_decoder_params(params, n_pts)            # one-time cast/pad
    out = jax.block_until_ready(point_cloud_decoder(embedding, prep))
    ref = reference(embedding, params)
    assert out.shape == (B, n_pts, 3), out.shape
    err = float(jnp.max(jnp.abs(out - ref)))
    assert jnp.allclose(out, ref, atol=2e-3, rtol=2e-3), err

    # Case 2: forces the multi-tile + padding path (tile_n=128 -> out_dim=600
    # padded to 640, grid=(5,)).
    n_pts2 = 200
    params2 = init_params(k_p2, emb_dim, n_pts2)
    prep2 = prepare_decoder_params(params2, n_pts2, tile_n=128)
    out2 = jax.block_until_ready(point_cloud_decoder(embedding, prep2))
    ref2 = reference(embedding, params2)
    assert out2.shape == (B, n_pts2, 3), out2.shape
    err2 = float(jnp.max(jnp.abs(out2 - ref2)))
    assert jnp.allclose(out2, ref2, atol=2e-3, rtol=2e-3), err2

    print("KERNEL_OK")
</pallas_src>

<mosaic_0001>
module attributes {stable_mosaic.version = 11 : i64} {
  func.func @mlp12_kernel(%arg0: memref<2x32xf32, #tpu.memory_space<vmem>>, %arg1: memref<32x512xf32, #tpu.memory_space<vmem>>, %arg2: memref<1x512xf32, #tpu.memory_space<vmem>>, %arg3: memref<512x1024xf32, #tpu.memory_space<vmem>>, %arg4: memref<1x1024xf32, #tpu.memory_space<vmem>>, %arg5: memref<2x1024xbf16, #tpu.memory_space<vmem>>) attributes {dimension_semantics = [], scalar_prefetch = 0 : i64, scratch_operands = 0 : i64, tpu.core_type = #tpu.core_type<tc>} {
    %c0 = arith.constant 0 : index
    %c0_0 = arith.constant 0 : index
    %0 = vector.load %arg0[%c0, %c0_0] : memref<2x32xf32, #tpu.memory_space<vmem>>, vector<2x32xf32>
    %c0_1 = arith.constant 0 : index
    %c0_2 = arith.constant 0 : index
    %1 = vector.load %arg1[%c0_1, %c0_2] : memref<32x512xf32, #tpu.memory_space<vmem>>, vector<32x512xf32>
    %cst = arith.constant dense<0.000000e+00> : vector<2x512xf32>
    %2 = tpu.matmul %0, %1, %cst {dimension_numbers = #tpu.dot_dimension_numbers<[1], [0], [0], [1], [0, 0, 1, 1], [], []>} : vector<2x32xf32>, vector<32x512xf32>, vector<2x512xf32> -> vector<2x512xf32>
    %c0_3 = arith.constant 0 : index
    %c0_4 = arith.constant 0 : index
    %3 = vector.load %arg2[%c0_3, %c0_4] : memref<1x512xf32, #tpu.memory_space<vmem>>, vector<1x512xf32>
    %4 = vector.broadcast %3 : vector<1x512xf32> to vector<2x512xf32>
    %5 = arith.addf %2, %4 : vector<2x512xf32>
    %cst_5 = arith.constant 0.000000e+00 : f32
    %6 = vector.broadcast %cst_5 : f32 to vector<2x512xf32>
    %7 = arith.cmpf ogt, %5, %6 : vector<2x512xf32>
    %cst_6 = arith.constant 0.00999999977 : f32
    %8 = vector.broadcast %cst_6 : f32 to vector<2x512xf32>
    %9 = arith.mulf %8, %5 : vector<2x512xf32>
    %10 = arith.select %7, %5, %9 : vector<2x512xi1>, vector<2x512xf32>
    %c0_7 = arith.constant 0 : index
    %c0_8 = arith.constant 0 : index
    %11 = vector.load %arg3[%c0_7, %c0_8] : memref<512x1024xf32, #tpu.memory_space<vmem>>, vector<512x1024xf32>
    %cst_9 = arith.constant dense<0.000000e+00> : vector<2x1024xf32>
    %12 = tpu.matmul %10, %11, %cst_9 {dimension_numbers = #tpu.dot_dimension_numbers<[1], [0], [0], [1], [0, 0, 1, 1], [], []>} : vector<2x512xf32>, vector<512x1024xf32>, vector<2x1024xf32> -> vector<2x1024xf32>
    %c0_10 = arith.constant 0 : index
    %c0_11 = arith.constant 0 : index
    %13 = vector.load %arg4[%c0_10, %c0_11] : memref<1x1024xf32, #tpu.memory_space<vmem>>, vector<1x1024xf32>
    %14 = vector.broadcast %13 : vector<1x1024xf32> to vector<2x1024xf32>
    %15 = arith.addf %12, %14 : vector<2x1024xf32>
    %cst_12 = arith.constant 0.000000e+00 : f32
    %16 = vector.broadcast %cst_12 : f32 to vector<2x1024xf32>
    %17 = arith.cmpf ogt, %15, %16 : vector<2x1024xf32>
    %cst_13 = arith.constant 0.00999999977 : f32
    %18 = vector.broadcast %cst_13 : f32 to vector<2x1024xf32>
    %19 = arith.mulf %18, %15 : vector<2x1024xf32>
    %20 = arith.select %17, %15, %19 : vector<2x1024xi1>, vector<2x1024xf32>
    %21 = arith.truncf %20 : vector<2x1024xf32> to vector<2x1024xbf16>
    %c0_14 = arith.constant 0 : index
    %c0_15 = arith.constant 0 : index
    %22 = vector.load %arg5[%c0_14, %c0_15] : memref<2x1024xbf16, #tpu.memory_space<vmem>>, vector<2x1024xbf16>
    tpu.vector_store %arg5[%c0_14, %c0_15], %21 {strides = array<i32>} : memref<2x1024xbf16, #tpu.memory_space<vmem>>, vector<2x1024xbf16>,
    return
  }
}

</mosaic_0001>

<bundles_post_ra>
// kernel: tpu_custom_call.1
= control target key start
LH: loop header
LB: loop body
LE: loop exit
PB: predicated region body
PF: predicated region fallthrough
CT: control target
= control target key end

     0   :  { %10 = vsyncpa [#allocation3], 0  ;;  %s1767_s0 = inlined_call_operand.hbm [shape: f32[2,32], index: 0, kind: input, shape index: {}]   ;;  %s1768_s1 = inlined_call_operand.hbm [shape: f32[32,512], index: 1, kind: input, shape index: {}]   ;;  %s1769_s2 = inlined_call_operand.hbm [shape: f32[1,512], index: 2, kind: input, shape index: {}]   ;;  %s1770_s3 = inlined_call_operand.hbm [shape: f32[512,1024], index: 3, kind: input, shape index: {}]   ;;  %s1771_s4 = inlined_call_operand.hbm [shape: f32[1,1024], index: 4, kind: input, shape index: {}]   ;;  %s1772_s5 = inlined_call_operand.hbm [shape: bf16[2,1024], index: 5, kind: output, shape index: {}]  }
   0x1   :  { %11 = vsyncpa [#allocation6], 0 }
   0x2   :  { %12 = vsyncpa [#allocation9], 0 }
   0x3   :  { %13 = vsyncpa [#allocation4], 0  ;;  %s1656_s18 = smov [#allocation5]  }
   0x4   :  { %s29_s19 = sshll.u32 %s1656_s18, 4  ;;  %s30_s19 = int_to_ptr.vmem [resolvable:$true] %s29_s19 }
   0x5   :  { %s1536_s20 = scalar_lea.vmem %s30_s19, 2048  ;;  %p1541_p1 = scmp.lt.s32.totalorder %s30_s19, %s30_s19 }
   0x6   :  { %p1537_p0 = scmp.ne.s32.totalorder %s30_s19, %s1536_s20  ;;  %p1542_p2 = scmp.lt.s32.totalorder %s1536_s20, %s1536_s20 }
   0x8   :  { %p1543_p3 = por %p1542_p2, %p1541_p1 }
   0xa   :  { %p1544_p4 = pnand %p1543_p3, %p1537_p0 }
   0xc   :  { %1547 = shalt.err (!%p1544_p4)
}
   0xd   :  { %s1657_s21 = smov 512   ;;  %s1658_s22 = smov 32  }
   0xe   :  { %35 = dma.hbm_to_vmem [thread:$0]  %s1768_s1, 2048, %s30_s19, [#allocation6], %s1657_s21, %s1657_s21, %s1658_s22  }
   0xf   :  { %s1659_s25 = smov [#allocation8]  }
  0x10   :  { %s51_s26 = sshll.u32 %s1659_s25, 4  ;;  %s52_s26 = int_to_ptr.vmem [resolvable:$true] %s51_s26 }
  0x11   :  { %s1556_s27 = scalar_lea.vmem %s52_s26, 65536  ;;  %p1561_p6 = scmp.lt.s32.totalorder %s52_s26, %s52_s26 }
  0x12   :  { %p1557_p5 = scmp.ne.s32.totalorder %s52_s26, %s1556_s27  ;;  %p1562_p7 = scmp.lt.s32.totalorder %s1556_s27, %s1556_s27 }
  0x14   :  { %p1563_p8 = por %p1562_p7, %p1561_p6 }
  0x16   :  { %p1564_p9 = pnand %p1563_p8, %p1557_p5 }
  0x18   :  { %1567 = shalt.err (!%p1564_p9)
}
  0x19   :  { %s1660_s28 = smov 1024   ;;  %s1661_s29 = smov 64  }
  0x1a   :  { %57 = dma.hbm_to_vmem [thread:$0]  %s1770_s3, 65536, %s52_s26, [#allocation9], %s1660_s28, %s1660_s28, %s1661_s29  }
  0x1b   :  { %s1662_s7 = smov [#allocation2]   ;;  %s1663_s9 = smov [#allocation7]  }
  0x1c   :  { %s20_s8 = sshll.u32 %s1662_s7, 4  ;;  %s42_s1 = sshll.u32 %s1663_s9, 4  ;;  %s21_s8 = int_to_ptr.vmem [resolvable:$true] %s20_s8  ;;  %s43_s1 = int_to_ptr.vmem [resolvable:$true] %s42_s1 }
  0x1d   :  { %s1576_s10 = scalar_lea.vmem %s21_s8, 32  ;;  %p1581_p11 = scmp.lt.s32.totalorder %s21_s8, %s21_s8 }
  0x1e   :  { %p1577_p10 = scmp.ne.s32.totalorder %s21_s8, %s1576_s10  ;;  %p1582_p12 = scmp.lt.s32.totalorder %s1576_s10, %s1576_s10 }
  0x20   :  { %p1583_p13 = por %p1582_p12, %p1581_p11 }
  0x22   :  { %p1584_p0 = pnand %p1583_p13, %p1577_p10 }
  0x24   :  { %1587 = shalt.err (!%p1584_p0)
}
  0x25   :  { %23 = dma.hbm_to_vmem [thread:$0]  %s1767_s0, 32, %s21_s8, [#allocation3]  }
  0x26   :  { %s1596_s13 = scalar_lea.vmem %s43_s1, 64  ;;  %p1601_p2 = scmp.lt.s32.totalorder %s43_s1, %s43_s1 }
  0x27   :  { %p1597_p1 = scmp.ne.s32.totalorder %s43_s1, %s1596_s13  ;;  %p1602_p3 = scmp.lt.s32.totalorder %s1596_s13, %s1596_s13 }
  0x29   :  { %p1603_p4 = por %p1602_p3, %p1601_p2 }
  0x2b   :  { %p1604_p5 = pnand %p1603_p4, %p1597_p1 }
  0x2d   :  { %1607 = shalt.err (!%p1604_p5)
}
  0x2e   :  { %45 = dma.hbm_to_vmem [thread:$0]  %s1769_s2, 64, %s43_s1, [#allocation6]  }
  0x2f   :  { %s1664_s15 = smov [#allocation10]  }
  0x30   :  { %s64_s16 = sshll.u32 %s1664_s15, 4  ;;  %s65_s16 = int_to_ptr.vmem [resolvable:$true] %s64_s16 }
  0x31   :  { %s1616_s17 = scalar_lea.vmem %s65_s16, 128  ;;  %p1621_p7 = scmp.lt.s32.totalorder %s65_s16, %s65_s16 }
  0x32   :  { %p1617_p6 = scmp.ne.s32.totalorder %s65_s16, %s1616_s17  ;;  %p1622_p8 = scmp.lt.s32.totalorder %s1616_s17, %s1616_s17 }
  0x34   :  { %p1623_p9 = por %p1622_p8, %p1621_p7 }
  0x36   :  { %p1624_p10 = pnand %p1623_p9, %p1617_p6 }
  0x38   :  { %1627 = shalt.err (!%p1624_p10)
}
  0x39   :  { %67 = dma.hbm_to_vmem [thread:$0]  %s1771_s4, 128, %s65_s16, [#allocation9]  }
  0x3a   :  { %1648 = dma.done.wait [#allocation3], 32  }
  0x3b   :  { %1649 = vsyncadd [#allocation3], 4294967264 }
  0x3c   :  { %1650 = dma.done.wait [#allocation6], 2112  }
  0x3d   :  { %1651 = vsyncadd [#allocation6], 4294965184 }
  0x3e   :  { %1652 = dma.done.wait [#allocation9], 65664  }
  0x3f   :  { %1653 = vsyncadd [#allocation9], 4294901632  ;;  %v1665_v0 = vmov 0.0   ;;  %v97_v1 = vld [vmem:[#allocation5 + $0x68] sm:$0xff]  ;;  %v99_v2 = vld [vmem:[#allocation5 + $0x78] sm:$0xff]  ;;  %vm122_vm0 = vcmask 261120  }
  0x40   :  { %190 = vmatprep.mubr.f32.mxu0 %v1665_v0  ;;  %261 = vmatprep.mubr.f32.mxu1 %v1665_v0  ;;  %v96_v3 = vld [vmem:[#allocation5 + $0x60] sm:$0xff]  ;;  %v98_v4 = vld [vmem:[#allocation5 + $0x70] sm:$0xff]  ;;  %v93_v5 = vld [vmem:[#allocation5 + $0x48] sm:$0xff]  ;;  %s1667_s2 = smov [#allocation11]  }
  0x41   :  { %150 = vmatprep.subr.mxu0 %v97_v1  ;;  %221 = vmatprep.subr.mxu1 %v99_v2  ;;  %v95_v6 = vld [vmem:[#allocation5 + $0x58] sm:$0xff]  ;;  %v92_v7 = vld [vmem:[#allocation5 + $0x40] sm:$0xff]  ;;  %v94_v8 = vld [vmem:[#allocation5 + $0x50] sm:$0xff]  ;;  %s1499_s4 = sshll.u32 %s1667_s2, 4  ;;  %s1500_s4 = int_to_ptr.vmem [resolvable:$true] %s1499_s4 }
  0x42   :  { %151 = vmatpush1.msra.mxu0 %v96_v3  ;;  %222 = vmatpush1.msra.mxu1 %v98_v4  ;;  %v89_v9 = vld [vmem:[#allocation5 + $0x28] sm:$0xff]  ;;  %v91_v10 = vld [vmem:[#allocation5 + $0x38] sm:$0xff]  ;;  %v88_v11 = vld [vmem:[#allocation5 + $0x20] sm:$0xff]  ;;  %s1628_s19 = scalar_lea.vmem %s1500_s4, 128  ;;  %p1633_p12 = scmp.lt.s32.totalorder %s1500_s4, %s1500_s4 }
  0x43   :  { %152 = vmatprep.subr.mxu0 %v93_v5  ;;  %223 = vmatprep.subr.mxu1 %v95_v6  ;;  %v90_v12 = vld [vmem:[#allocation5 + $0x30] sm:$0xff]  ;;  %v85_v13 = vld [vmem:[#allocation5 + $0x8] sm:$0xff]  ;;  %v87_v14 = vld [vmem:[#allocation5 + $0x18] sm:$0xff]  ;;  %p1629_p11 = scmp.ne.s32.totalorder %s1500_s4, %s1628_s19  ;;  %p1634_p13 = scmp.lt.s32.totalorder %s1628_s19, %s1628_s19 }
  0x44   :  { %153 = vmatpush1.msra.mxu0 %v92_v7  ;;  %224 = vmatpush1.msra.mxu1 %v94_v8  ;;  %v84_v15 = vld [vmem:[#allocation5] sm:$0xff]  ;;  %v86_v16 = vld [vmem:[#allocation5 + $0x10] sm:$0xff]  ;;  %v83_v17 = vld [vmem:[#allocation2] sm:$0x3] }
  0x45   :  { %154 = vmatprep.subr.mxu0 %v89_v9  ;;  %225 = vmatprep.subr.mxu1 %v91_v10  ;;  %v401_v18 = vld [vmem:[#allocation8 + $0x3c8] sm:$0xff]  ;;  %v400_v20 = vld [vmem:[#allocation8 + $0x3c0] sm:$0xff]  ;;  %p1635_p0 = por %p1634_p13, %p1633_p12 }
  0x46   :  { %155 = vmatpush1.msra.mxu0 %v88_v11  ;;  %226 = vmatpush1.msra.mxu1 %v90_v12  ;;  %v657_v19 = vld [vmem:[#allocation8 + $0xbc8] sm:$0xff]  ;;  %v656_v21 = vld [vmem:[#allocation8 + $0xbc0] sm:$0xff] }
  0x47   :  { %156 = vmatprep.subr.mxu0 %v85_v13  ;;  %227 = vmatprep.subr.mxu1 %v87_v14  ;;  %v393_v22 = vld [vmem:[#allocation8 + $0x388] sm:$0xff]  ;;  %v392_v24 = vld [vmem:[#allocation8 + $0x380] sm:$0xff]  ;;  %p1636_p1 = pnand %p1635_p0, %p1629_p11 }
  0x48   :  { %157 = vmatpush1.msra.mxu0 %v84_v15  ;;  %228 = vmatpush1.msra.mxu1 %v86_v16  ;;  %v649_v23 = vld [vmem:[#allocation8 + $0xb88] sm:$0xff]  ;;  %v648_v25 = vld [vmem:[#allocation8 + $0xb80] sm:$0xff] }
  0x49   :  { %1510 = vmatmul.mubr.msk.f32.vlgmr.msra.gmra.mxu0 %vm122_vm0, %v83_v17  ;;  %1511 = vmatmul.mubr.msk.f32.vlgmr.msra.gmra.mxu1 %vm122_vm0, %v83_v17  ;;  %v385_v26 = vld [vmem:[#allocation8 + $0x348] sm:$0xff]  ;;  %v384_v28 = vld [vmem:[#allocation8 + $0x340] sm:$0xff] }
  0x4a   :  { %834 = vmatprep.subr.mxu0 %v401_v18  ;;  %905 = vmatprep.subr.mxu1 %v657_v19  ;;  %v641_v27 = vld [vmem:[#allocation8 + $0xb48] sm:$0xff]  ;;  %v640_v29 = vld [vmem:[#allocation8 + $0xb40] sm:$0xff] }
  0x4b   :  { %835 = vmatpush1.msra.mxu0 %v400_v20  ;;  %906 = vmatpush1.msra.mxu1 %v656_v21  ;;  %v377_v30 = vld [vmem:[#allocation8 + $0x308] sm:$0xff]  ;;  %v376_v32 = vld [vmem:[#allocation8 + $0x300] sm:$0xff] }
  0x4c   :  { %836 = vmatprep.subr.mxu0 %v393_v22  ;;  %907 = vmatprep.subr.mxu1 %v649_v23  ;;  %v633_v31 = vld [vmem:[#allocation8 + $0xb08] sm:$0xff]  ;;  %v632_v33 = vld [vmem:[#allocation8 + $0xb00] sm:$0xff] }
  0x4d   :  { %837 = vmatpush1.msra.mxu0 %v392_v24  ;;  %908 = vmatpush1.msra.mxu1 %v648_v25  ;;  %v369_v34 = vld [vmem:[#allocation8 + $0x2c8] sm:$0xff]  ;;  %v368_v36 = vld [vmem:[#allocation8 + $0x2c0] sm:$0xff] }
  0x4e   :  { %838 = vmatprep.subr.mxu0 %v385_v26  ;;  %909 = vmatprep.subr.mxu1 %v641_v27  ;;  %v625_v35 = vld [vmem:[#allocation8 + $0xac8] sm:$0xff]  ;;  %v624_v37 = vld [vmem:[#allocation8 + $0xac0] sm:$0xff] }
  0x4f   :  { %839 = vmatpush1.msra.mxu0 %v384_v28  ;;  %910 = vmatpush1.msra.mxu1 %v640_v29  ;;  %v361_v38 = vld [vmem:[#allocation8 + $0x288] sm:$0xff]  ;;  %v360_v40 = vld [vmem:[#allocation8 + $0x280] sm:$0xff] }
  0x50   :  { %840 = vmatprep.subr.mxu0 %v377_v30  ;;  %911 = vmatprep.subr.mxu1 %v633_v31  ;;  %v617_v39 = vld [vmem:[#allocation8 + $0xa88] sm:$0xff]  ;;  %v616_v41 = vld [vmem:[#allocation8 + $0xa80] sm:$0xff] }
  0x51   :  { %841 = vmatpush1.msra.mxu0 %v376_v32  ;;  %912 = vmatpush1.msra.mxu1 %v632_v33  ;;  %v353_v42 = vld [vmem:[#allocation8 + $0x248] sm:$0xff]  ;;  %v352_v44 = vld [vmem:[#allocation8 + $0x240] sm:$0xff] }
  0x52   :  { %842 = vmatprep.subr.mxu0 %v369_v34  ;;  %913 = vmatprep.subr.mxu1 %v625_v35  ;;  %v609_v43 = vld [vmem:[#allocation8 + $0xa48] sm:$0xff]  ;;  %v608_v45 = vld [vmem:[#allocation8 + $0xa40] sm:$0xff] }
  0x53   :  { %843 = vmatpush1.msra.mxu0 %v368_v36  ;;  %914 = vmatpush1.msra.mxu1 %v624_v37  ;;  %v345_v46 = vld [vmem:[#allocation8 + $0x208] sm:$0xff]  ;;  %v344_v48 = vld [vmem:[#allocation8 + $0x200] sm:$0xff] }
  0x54   :  { %844 = vmatprep.subr.mxu0 %v361_v38  ;;  %915 = vmatprep.subr.mxu1 %v617_v39  ;;  %v601_v47 = vld [vmem:[#allocation8 + $0xa08] sm:$0xff]  ;;  %v600_v49 = vld [vmem:[#allocation8 + $0xa00] sm:$0xff] }
  0x55   :  { %845 = vmatpush1.msra.mxu0 %v360_v40  ;;  %916 = vmatpush1.msra.mxu1 %v616_v41  ;;  %v337_v50 = vld [vmem:[#allocation8 + $0x1c8] sm:$0xff]  ;;  %v336_v52 = vld [vmem:[#allocation8 + $0x1c0] sm:$0xff] }
  0x56   :  { %846 = vmatprep.subr.mxu0 %v353_v42  ;;  %917 = vmatprep.subr.mxu1 %v609_v43  ;;  %v593_v51 = vld [vmem:[#allocation8 + $0x9c8] sm:$0xff]  ;;  %v592_v53 = vld [vmem:[#allocation8 + $0x9c0] sm:$0xff] }
  0x57   :  { %847 = vmatpush1.msra.mxu0 %v352_v44  ;;  %918 = vmatpush1.msra.mxu1 %v608_v45  ;;  %v329_v54 = vld [vmem:[#allocation8 + $0x188] sm:$0xff]  ;;  %v328_v56 = vld [vmem:[#allocation8 + $0x180] sm:$0xff] }
  0x58   :  { %848 = vmatprep.subr.mxu0 %v345_v46  ;;  %919 = vmatprep.subr.mxu1 %v601_v47  ;;  %v585_v55 = vld [vmem:[#allocation8 + $0x988] sm:$0xff]  ;;  %v584_v57 = vld [vmem:[#allocation8 + $0x980] sm:$0xff] }
  0x59   :  { %849 = vmatpush1.msra.mxu0 %v344_v48  ;;  %920 = vmatpush1.msra.mxu1 %v600_v49  ;;  %v321_v58 = vld [vmem:[#allocation8 + $0x148] sm:$0xff]  ;;  %v320_v60 = vld [vmem:[#allocation8 + $0x140] sm:$0xff] }
  0x5a   :  { %850 = vmatprep.subr.mxu0 %v337_v50  ;;  %921 = vmatprep.subr.mxu1 %v593_v51  ;;  %v577_v59 = vld [vmem:[#allocation8 + $0x948] sm:$0xff]  ;;  %v576_v61 = vld [vmem:[#allocation8 + $0x940] sm:$0xff] }
  0x5b   :  { %851 = vmatpush1.msra.mxu0 %v336_v52  ;;  %922 = vmatpush1.msra.mxu1 %v592_v53  ;;  %v313_v62 = vld [vmem:[#allocation8 + $0x108] sm:$0xff]  ;;  %v312_v0 = vld [vmem:[#allocation8 + $0x100] sm:$0xff] }
  0x5c   :  { %852 = vmatprep.subr.mxu0 %v329_v54  ;;  %923 = vmatprep.subr.mxu1 %v585_v55  ;;  %v569_v63 = vld [vmem:[#allocation8 + $0x908] sm:$0xff]  ;;  %v568_v1 = vld [vmem:[#allocation8 + $0x900] sm:$0xff] }
  0x5d   :  { %853 = vmatpush1.msra.mxu0 %v328_v56  ;;  %924 = vmatpush1.msra.mxu1 %v584_v57  ;;  %v305_v2 = vld [vmem:[#allocation8 + $0xc8] sm:$0xff]  ;;  %v304_v4 = vld [vmem:[#allocation8 + $0xc0] sm:$0xff] }
  0x5e   :  { %854 = vmatprep.subr.mxu0 %v321_v58  ;;  %925 = vmatprep.subr.mxu1 %v577_v59  ;;  %v561_v3 = vld [vmem:[#allocation8 + $0x8c8] sm:$0xff]  ;;  %v560_v5 = vld [vmem:[#allocation8 + $0x8c0] sm:$0xff] }
  0x5f   :  { %855 = vmatpush1.msra.mxu0 %v320_v60  ;;  %926 = vmatpush1.msra.mxu1 %v576_v61  ;;  %v297_v6 = vld [vmem:[#allocation8 + $0x88] sm:$0xff]  ;;  %v296_v8 = vld [vmem:[#allocation8 + $0x80] sm:$0xff] }
  0x60   :  { %856 = vmatprep.subr.mxu0 %v313_v62  ;;  %927 = vmatprep.subr.mxu1 %v569_v63  ;;  %v553_v7 = vld [vmem:[#allocation8 + $0x888] sm:$0xff]  ;;  %v552_v9 = vld [vmem:[#allocation8 + $0x880] sm:$0xff] }
  0x61   :  { %857 = vmatpush1.msra.mxu0 %v312_v0  ;;  %928 = vmatpush1.msra.mxu1 %v568_v1  ;;  %v289_v10 = vld [vmem:[#allocation8 + $0x48] sm:$0xff]  ;;  %v288_v12 = vld [vmem:[#allocation8 + $0x40] sm:$0xff] }
  0x62   :  { %858 = vmatprep.subr.mxu0 %v305_v2  ;;  %929 = vmatprep.subr.mxu1 %v561_v3  ;;  %v545_v11 = vld [vmem:[#allocation8 + $0x848] sm:$0xff]  ;;  %v544_v13 = vld [vmem:[#allocation8 + $0x840] sm:$0xff] }
  0x63   :  { %859 = vmatpush1.msra.mxu0 %v304_v4  ;;  %930 = vmatpush1.msra.mxu1 %v560_v5  ;;  %v281_v14 = vld [vmem:[#allocation8 + $0x8] sm:$0xff]  ;;  %v280_v16 = vld [vmem:[#allocation8] sm:$0xff] }
  0x64   :  { %860 = vmatprep.subr.mxu0 %v297_v6  ;;  %931 = vmatprep.subr.mxu1 %v553_v7  ;;  %v537_v15 = vld [vmem:[#allocation8 + $0x808] sm:$0xff]  ;;  %v536_v17 = vld [vmem:[#allocation8 + $0x800] sm:$0xff] }
  0x65   :  { %861 = vmatpush1.msra.mxu0 %v296_v8  ;;  %932 = vmatpush1.msra.mxu1 %v552_v9  ;;  %v529_v18 = vld [vmem:[#allocation8 + $0x7c8] sm:$0xff]  ;;  %v528_v20 = vld [vmem:[#allocation8 + $0x7c0] sm:$0xff] }
  0x66   :  { %862 = vmatprep.subr.mxu0 %v289_v10  ;;  %933 = vmatprep.subr.mxu1 %v545_v11  ;;  %v785_v19 = vld [vmem:[#allocation8 + $0xfc8] sm:$0xff]  ;;  %v784_v21 = vld [vmem:[#allocation8 + $0xfc0] sm:$0xff] }
  0x67   :  { %863 = vmatpush1.msra.mxu0 %v288_v12  ;;  %934 = vmatpush1.msra.mxu1 %v544_v13  ;;  %v521_v22 = vld [vmem:[#allocation8 + $0x788] sm:$0xff]  ;;  %v520_v24 = vld [vmem:[#allocation8 + $0x780] sm:$0xff] }
  0x68   :  { %864 = vmatprep.subr.mxu0 %v281_v14  ;;  %935 = vmatprep.subr.mxu1 %v537_v15  ;;  %v777_v23 = vld [vmem:[#allocation8 + $0xf88] sm:$0xff]  ;;  %v776_v25 = vld [vmem:[#allocation8 + $0xf80] sm:$0xff] }
  0x69   :  { %865 = vmatpush1.msra.mxu0 %v280_v16  ;;  %936 = vmatpush1.msra.mxu1 %v536_v17  ;;  %v513_v26 = vld [vmem:[#allocation8 + $0x748] sm:$0xff]  ;;  %v512_v28 = vld [vmem:[#allocation8 + $0x740] sm:$0xff] }
  0x6a   :  { %866 = vmatprep.subr.mxu0 %v529_v18  ;;  %937 = vmatprep.subr.mxu1 %v785_v19  ;;  %v769_v27 = vld [vmem:[#allocation8 + $0xf48] sm:$0xff]  ;;  %v768_v29 = vld [vmem:[#allocation8 + $0xf40] sm:$0xff]  ;;  %v403_v18 = vld [vmem:[#allocation8 + $0x3d8] sm:$0xff] }
  0x6b   :  { %867 = vmatpush2.msra.mxu0 %v528_v20  ;;  %938 = vmatpush2.msra.mxu1 %v784_v21  ;;  %v505_v30 = vld [vmem:[#allocation8 + $0x708] sm:$0xff]  ;;  %v504_v32 = vld [vmem:[#allocation8 + $0x700] sm:$0xff]  ;;  %v659_v19 = vld [vmem:[#allocation8 + $0xbd8] sm:$0xff]  ;;  %v102_v20 = vlaneseq }
  0x6c   :  { %868 = vmatprep.subr.mxu0 %v521_v22  ;;  %939 = vmatprep.subr.mxu1 %v777_v23  ;;  %v761_v31 = vld [vmem:[#allocation8 + $0xf08] sm:$0xff]  ;;  %v760_v33 = vld [vmem:[#allocation8 + $0xf00] sm:$0xff] }
  0x6d   :  { %869 = vmatpush2.msra.mxu0 %v520_v24  ;;  %940 = vmatpush2.msra.mxu1 %v776_v25  ;;  %v497_v34 = vld [vmem:[#allocation8 + $0x6c8] sm:$0xff]  ;;  %v496_v36 = vld [vmem:[#allocation8 + $0x6c0] sm:$0xff]  ;;  %v1713_v21 = vshrl.u32 %v102_v20, 7  ;;  %v100_v24 = vld [vmem:[#allocation7] sm:$0xf] }
  0x6e   :  { %870 = vmatprep.subr.mxu0 %v513_v26  ;;  %941 = vmatprep.subr.mxu1 %v769_v27  ;;  %v753_v35 = vld [vmem:[#allocation8 + $0xec8] sm:$0xff]  ;;  %v752_v37 = vld [vmem:[#allocation8 + $0xec0] sm:$0xff]  ;;  %v586_v20 = vld [vmem:[#allocation8 + $0x990] sm:$0xff] }
  0x6f   :  { %871 = vmatpush2.msra.mxu0 %v512_v28  ;;  %942 = vmatpush2.msra.mxu1 %v768_v29  ;;  %v489_v38 = vld [vmem:[#allocation8 + $0x688] sm:$0xff]  ;;  %v488_v40 = vld [vmem:[#allocation8 + $0x680] sm:$0xff]  ;;  %v104_v22 = vsub.s32 0, %v1713_v21  ;;  %v112_v23 = vsub.s32 2, %v1713_v21  ;;  %v108_v25 = vsub.s32 1, %v1713_v21  ;;  %v116_v26 = vsub.s32 3, %v1713_v21 }
  0x70   :  { %872 = vmatprep.subr.mxu0 %v505_v30  ;;  %943 = vmatprep.subr.mxu1 %v761_v31  ;;  %v745_v39 = vld [vmem:[#allocation8 + $0xe88] sm:$0xff]  ;;  %v744_v41 = vld [vmem:[#allocation8 + $0xe80] sm:$0xff] }
  0x71   :  { %873 = vmatpush2.msra.mxu0 %v504_v32  ;;  %944 = vmatpush2.msra.mxu1 %v760_v33  ;;  %v481_v42 = vld [vmem:[#allocation8 + $0x648] sm:$0xff]  ;;  %v480_v44 = vld [vmem:[#allocation8 + $0x640] sm:$0xff]  ;;  %v105_v27 = vrot.slane %v100_v24, %v104_v22  ;;  %v113_v28 = vrot.slane %v100_v24, %v112_v23  ;;  %v109_v31 = vrot.slane %v100_v24, %v108_v25 }
  0x72   :  { %874 = vmatprep.subr.mxu0 %v497_v34  ;;  %945 = vmatprep.subr.mxu1 %v753_v35  ;;  %v737_v43 = vld [vmem:[#allocation8 + $0xe48] sm:$0xff]  ;;  %v736_v45 = vld [vmem:[#allocation8 + $0xe40] sm:$0xff]  ;;  %v117_v32 = vrot.slane %v100_v24, %v116_v26  ;;  %v323_v24 = vld [vmem:[#allocation8 + $0x158] sm:$0xff] }
  0x73   :  { %875 = vmatpush2.msra.mxu0 %v496_v36  ;;  %946 = vmatpush2.msra.mxu1 %v752_v37  ;;  %v473_v46 = vld [vmem:[#allocation8 + $0x608] sm:$0xff]  ;;  %v472_v48 = vld [vmem:[#allocation8 + $0x600] sm:$0xff] }
  0x74   :  { %876 = vmatprep.subr.mxu0 %v489_v38  ;;  %947 = vmatprep.subr.mxu1 %v745_v39  ;;  %v729_v47 = vld [vmem:[#allocation8 + $0xe08] sm:$0xff]  ;;  %v728_v49 = vld [vmem:[#allocation8 + $0xe00] sm:$0xff] }
  0x75   :  { %877 = vmatpush2.msra.mxu0 %v488_v40  ;;  %948 = vmatpush2.msra.mxu1 %v744_v41  ;;  %v465_v50 = vld [vmem:[#allocation8 + $0x5c8] sm:$0xff]  ;;  %v464_v52 = vld [vmem:[#allocation8 + $0x5c0] sm:$0xff] }
  0x76   :  { %878 = vmatprep.subr.mxu0 %v481_v42  ;;  %949 = vmatprep.subr.mxu1 %v737_v43  ;;  %v721_v51 = vld [vmem:[#allocation8 + $0xdc8] sm:$0xff]  ;;  %v720_v53 = vld [vmem:[#allocation8 + $0xdc0] sm:$0xff] }
  0x77   :  { %879 = vmatpush2.msra.mxu0 %v480_v44  ;;  %950 = vmatpush2.msra.mxu1 %v736_v45  ;;  %v457_v54 = vld [vmem:[#allocation8 + $0x588] sm:$0xff]  ;;  %v456_v56 = vld [vmem:[#allocation8 + $0x580] sm:$0xff]  ;;  %v402_v45 = vld [vmem:[#allocation8 + $0x3d0] sm:$0xff] }
  0x78   :  { %880 = vmatprep.subr.mxu0 %v473_v46  ;;  %951 = vmatprep.subr.mxu1 %v729_v47  ;;  %v713_v55 = vld [vmem:[#allocation8 + $0xd88] sm:$0xff]  ;;  %v712_v57 = vld [vmem:[#allocation8 + $0xd80] sm:$0xff]  ;;  %v658_v46 = vld [vmem:[#allocation8 + $0xbd0] sm:$0xff] }
  0x79   :  { %881 = vmatpush2.msra.mxu0 %v472_v48  ;;  %952 = vmatpush2.msra.mxu1 %v728_v49  ;;  %v449_v58 = vld [vmem:[#allocation8 + $0x548] sm:$0xff]  ;;  %v448_v60 = vld [vmem:[#allocation8 + $0x540] sm:$0xff]  ;;  %v395_v49 = vld [vmem:[#allocation8 + $0x398] sm:$0xff] }
  0x7a   :  { %882 = vmatprep.subr.mxu0 %v465_v50  ;;  %953 = vmatprep.subr.mxu1 %v721_v51  ;;  %v705_v59 = vld [vmem:[#allocation8 + $0xd48] sm:$0xff]  ;;  %v704_v61 = vld [vmem:[#allocation8 + $0xd40] sm:$0xff]  ;;  %v651_v50 = vld [vmem:[#allocation8 + $0xb98] sm:$0xff] }
  0x7b   :  { %883 = vmatpush2.msra.mxu0 %v464_v52  ;;  %954 = vmatpush2.msra.mxu1 %v720_v53  ;;  %v441_v62 = vld [vmem:[#allocation8 + $0x508] sm:$0xff]  ;;  %v440_v0 = vld [vmem:[#allocation8 + $0x500] sm:$0xff]  ;;  %v394_v51 = vld [vmem:[#allocation8 + $0x390] sm:$0xff] }
  0x7c   :  { %884 = vmatprep.subr.mxu0 %v457_v54  ;;  %955 = vmatprep.subr.mxu1 %v713_v55  ;;  %v697_v63 = vld [vmem:[#allocation8 + $0xd08] sm:$0xff]  ;;  %v696_v1 = vld [vmem:[#allocation8 + $0xd00] sm:$0xff]  ;;  %v650_v52 = vld [vmem:[#allocation8 + $0xb90] sm:$0xff] }
  0x7d   :  { %885 = vmatpush2.msra.mxu0 %v456_v56  ;;  %956 = vmatpush2.msra.mxu1 %v712_v57  ;;  %v433_v2 = vld [vmem:[#allocation8 + $0x4c8] sm:$0xff]  ;;  %v432_v4 = vld [vmem:[#allocation8 + $0x4c0] sm:$0xff]  ;;  %v387_v53 = vld [vmem:[#allocation8 + $0x358] sm:$0xff] }
  0x7e   :  { %886 = vmatprep.subr.mxu0 %v449_v58  ;;  %957 = vmatprep.subr.mxu1 %v705_v59  ;;  %v689_v3 = vld [vmem:[#allocation8 + $0xcc8] sm:$0xff]  ;;  %v688_v5 = vld [vmem:[#allocation8 + $0xcc0] sm:$0xff]  ;;  %v643_v54 = vld [vmem:[#allocation8 + $0xb58] sm:$0xff] }
  0x7f   :  { %887 = vmatpush2.msra.mxu0 %v448_v60  ;;  %958 = vmatpush2.msra.mxu1 %v704_v61  ;;  %v425_v6 = vld [vmem:[#allocation8 + $0x488] sm:$0xff]  ;;  %v424_v8 = vld [vmem:[#allocation8 + $0x480] sm:$0xff]  ;;  %v386_v55 = vld [vmem:[#allocation8 + $0x350] sm:$0xff] }
  0x80   :  { %888 = vmatprep.subr.mxu0 %v441_v62  ;;  %959 = vmatprep.subr.mxu1 %v697_v63  ;;  %v681_v7 = vld [vmem:[#allocation8 + $0xc88] sm:$0xff]  ;;  %v680_v9 = vld [vmem:[#allocation8 + $0xc80] sm:$0xff]  ;;  %v642_v56 = vld [vmem:[#allocation8 + $0xb50] sm:$0xff] }
  0x81   :  { %889 = vmatpush2.msra.mxu0 %v440_v0  ;;  %960 = vmatpush2.msra.mxu1 %v696_v1  ;;  %v417_v10 = vld [vmem:[#allocation8 + $0x448] sm:$0xff]  ;;  %v416_v12 = vld [vmem:[#allocation8 + $0x440] sm:$0xff]  ;;  %v379_v57 = vld [vmem:[#allocation8 + $0x318] sm:$0xff] }
  0x82   :  { %890 = vmatprep.subr.mxu0 %v433_v2  ;;  %961 = vmatprep.subr.mxu1 %v689_v3  ;;  %v673_v11 = vld [vmem:[#allocation8 + $0xc48] sm:$0xff]  ;;  %v672_v13 = vld [vmem:[#allocation8 + $0xc40] sm:$0xff]  ;;  %v635_v58 = vld [vmem:[#allocation8 + $0xb18] sm:$0xff] }
  0x83   :  { %891 = vmatpush2.msra.mxu0 %v432_v4  ;;  %962 = vmatpush2.msra.mxu1 %v688_v5  ;;  %v409_v14 = vld [vmem:[#allocation8 + $0x408] sm:$0xff]  ;;  %v408_v16 = vld [vmem:[#allocation8 + $0x400] sm:$0xff]  ;;  %v378_v59 = vld [vmem:[#allocation8 + $0x310] sm:$0xff] }
  0x84   :  { %892 = vmatprep.subr.mxu0 %v425_v6  ;;  %963 = vmatprep.subr.mxu1 %v681_v7  ;;  %v665_v15 = vld [vmem:[#allocation8 + $0xc08] sm:$0xff]  ;;  %v664_v17 = vld [vmem:[#allocation8 + $0xc00] sm:$0xff]  ;;  %v634_v60 = vld [vmem:[#allocation8 + $0xb10] sm:$0xff] }
  0x85   :  { %893 = vmatpush2.msra.mxu0 %v424_v8  ;;  %964 = vmatpush2.msra.mxu1 %v680_v9  ;;  %v371_v61 = vld [vmem:[#allocation8 + $0x2d8] sm:$0xff]  ;;  %v370_v63 = vld [vmem:[#allocation8 + $0x2d0] sm:$0xff] }
  0x86   :  { %894 = vmatprep.subr.mxu0 %v417_v10  ;;  %965 = vmatprep.subr.mxu1 %v673_v11  ;;  %v627_v62 = vld [vmem:[#allocation8 + $0xad8] sm:$0xff]  ;;  %v626_v0 = vld [vmem:[#allocation8 + $0xad0] sm:$0xff] }
  0x87   :  { %895 = vmatpush2.msra.mxu0 %v416_v12  ;;  %966 = vmatpush2.msra.mxu1 %v672_v13  ;;  %v363_v1 = vld [vmem:[#allocation8 + $0x298] sm:$0xff]  ;;  %v362_v3 = vld [vmem:[#allocation8 + $0x290] sm:$0xff] }
  0x88   :  { %896 = vmatprep.subr.mxu0 %v409_v14  ;;  %967 = vmatprep.subr.mxu1 %v665_v15  ;;  %v619_v2 = vld [vmem:[#allocation8 + $0xa98] sm:$0xff]  ;;  %v618_v4 = vld [vmem:[#allocation8 + $0xa90] sm:$0xff] }
  0x89   :  { %897 = vmatpush2.msra.mxu0 %v408_v16  ;;  %968 = vmatpush2.msra.mxu1 %v664_v17  ;;  %v355_v5 = vld [vmem:[#allocation8 + $0x258] sm:$0xff]  ;;  %v354_v7 = vld [vmem:[#allocation8 + $0x250] sm:$0xff] }
  0x8a   :  { %976 = vmatprep.subr.mxu0 %v403_v18  ;;  %1047 = vmatprep.subr.mxu1 %v659_v19  ;;  %v611_v6 = vld [vmem:[#allocation8 + $0xa58] sm:$0xff]  ;;  %v610_v8 = vld [vmem:[#allocation8 + $0xa50] sm:$0xff] }
  0x8b   :  { %v347_v9 = vld [vmem:[#allocation8 + $0x218] sm:$0xff]  ;;  %v346_v11 = vld [vmem:[#allocation8 + $0x210] sm:$0xff] }
  0x8c   :  { %v603_v10 = vld [vmem:[#allocation8 + $0xa18] sm:$0xff]  ;;  %v602_v12 = vld [vmem:[#allocation8 + $0xa10] sm:$0xff] }
  0x8d   :  { %v339_v13 = vld [vmem:[#allocation8 + $0x1d8] sm:$0xff]  ;;  %v338_v15 = vld [vmem:[#allocation8 + $0x1d0] sm:$0xff] }
  0x8e   :  { %v595_v14 = vld [vmem:[#allocation8 + $0x9d8] sm:$0xff]  ;;  %v594_v16 = vld [vmem:[#allocation8 + $0x9d0] sm:$0xff] }
  0x8f   :  { %v331_v17 = vld [vmem:[#allocation8 + $0x198] sm:$0xff]  ;;  %v330_v19 = vld [vmem:[#allocation8 + $0x190] sm:$0xff] }
  0x90   :  { %v587_v18 = vld [vmem:[#allocation8 + $0x998] sm:$0xff] }
 0x109   :  { %v192_v29 = vpop.f32.mrf.mxu0  ;;  %v263_v30 = vpop.f32.mrf.mxu1 }
 0x10a   :  { %v193_v33 = vadd.f32 %v192_v29, %v105_v27  ;;  %v264_v34 = vadd.f32 %v263_v30, %v113_v28  ;;  %v579_v27 = vld [vmem:[#allocation8 + $0x958] sm:$0xff]  ;;  %v322_v28 = vld [vmem:[#allocation8 + $0x150] sm:$0xff] }
 0x10b   :  { %v194_v35 = vpop.f32.mrf.mxu0  ;;  %v265_v36 = vpop.f32.mrf.mxu1  ;;  %v578_v29 = vld [vmem:[#allocation8 + $0x950] sm:$0xff]  ;;  %v315_v30 = vld [vmem:[#allocation8 + $0x118] sm:$0xff] }
 0x10c   :  { %v195_v37 = vadd.f32 %v194_v35, %v109_v31  ;;  %v266_v38 = vadd.f32 %v265_v36, %v117_v32  ;;  %vm268_vm1 = vcmp.gt.f32.partialorder %v193_v33, 0.0  ;;  %v272_v39 = vmul.f32 0.01, %v193_v33  ;;  %v571_v31 = vld [vmem:[#allocation8 + $0x918] sm:$0xff]  ;;  %v314_v32 = vld [vmem:[#allocation8 + $0x110] sm:$0xff] }
 0x10d   :  { %vm270_vm2 = vcmp.gt.f32.partialorder %v264_v34, 0.0  ;;  %v274_v40 = vmul.f32 0.01, %v264_v34  ;;  %v563_v35 = vld [vmem:[#allocation8 + $0x8d8] sm:$0xff]  ;;  %v306_v36 = vld [vmem:[#allocation8 + $0xd0] sm:$0xff] }
 0x10e   :  { %vm269_vm3 = vcmp.gt.f32.partialorder %v195_v37, 0.0  ;;  %v273_v41 = vmul.f32 0.01, %v195_v37  ;;  %vm271_vm4 = vcmp.gt.f32.partialorder %v266_v38, 0.0  ;;  %v275_v42 = vmul.f32 0.01, %v266_v38 }
 0x10f   :  { %v1733_v47 = vsel %vm268_vm1, %v193_v33, %v272_v39  ;;  %v1735_v48 = vsel %vm270_vm2, %v264_v34, %v274_v40  ;;  %v570_v33 = vld [vmem:[#allocation8 + $0x910] sm:$0xff]  ;;  %v307_v34 = vld [vmem:[#allocation8 + $0xd8] sm:$0xff] }
 0x110   :  { %v1727_v43 = vsel %vm269_vm3, %v195_v37, %v273_v41  ;;  %v1729_v44 = vsel %vm271_vm4, %v266_v38, %v275_v42  ;;  %v562_v37 = vld [vmem:[#allocation8 + $0x8d0] sm:$0xff]  ;;  %v299_v38 = vld [vmem:[#allocation8 + $0x98] sm:$0xff] }
 0x111   :  { %898 = vmatprep.mubr.f32.mxu0 %v1727_v43  ;;  %969 = vmatprep.mubr.f32.mxu1 %v1729_v44  ;;  %v555_v39 = vld [vmem:[#allocation8 + $0x898] sm:$0xff]  ;;  %v298_v40 = vld [vmem:[#allocation8 + $0x90] sm:$0xff] }
 0x112   :  { %899 = vmatmul.mubr.f32.vlgmr.msra.gmra.mxu0 %v1733_v47  ;;  %970 = vmatmul.mubr.f32.vlgmr.msra.gmra.mxu1 %v1735_v48  ;;  %v554_v41 = vld [vmem:[#allocation8 + $0x890] sm:$0xff]  ;;  %v291_v42 = vld [vmem:[#allocation8 + $0x58] sm:$0xff] }
 0x113   :  { %977 = vmatpush1.msra.mxu0 %v402_v45  ;;  %1048 = vmatpush1.msra.mxu1 %v658_v46  ;;  %v547_v45 = vld [vmem:[#allocation8 + $0x858] sm:$0xff]  ;;  %v290_v46 = vld [vmem:[#allocation8 + $0x50] sm:$0xff] }
 0x114   :  { %978 = vmatprep.subr.mxu0 %v395_v49  ;;  %1040 = vmatprep.mubr.f32.mxu0 %v1727_v43  ;;  %v546_v49 = vld [vmem:[#allocation8 + $0x850] sm:$0xff] }
 0x115   :  { %1049 = vmatprep.subr.mxu1 %v651_v50  ;;  %1111 = vmatprep.mubr.f32.mxu1 %v1729_v44  ;;  %v283_v50 = vld [vmem:[#allocation8 + $0x18] sm:$0xff] }
 0x116   :  { %979 = vmatpush1.msra.mxu0 %v394_v51  ;;  %1050 = vmatpush1.msra.mxu1 %v650_v52  ;;  %v539_v51 = vld [vmem:[#allocation8 + $0x818] sm:$0xff]  ;;  %v282_v52 = vld [vmem:[#allocation8 + $0x10] sm:$0xff] }
 0x117   :  { %980 = vmatprep.subr.mxu0 %v387_v53  ;;  %1051 = vmatprep.subr.mxu1 %v643_v54  ;;  %v538_v53 = vld [vmem:[#allocation8 + $0x810] sm:$0xff]  ;;  %v531_v54 = vld [vmem:[#allocation8 + $0x7d8] sm:$0xff] }
 0x118   :  { %981 = vmatpush1.msra.mxu0 %v386_v55  ;;  %1052 = vmatpush1.msra.mxu1 %v642_v56  ;;  %v787_v55 = vld [vmem:[#allocation8 + $0xfd8] sm:$0xff]  ;;  %v530_v56 = vld [vmem:[#allocation8 + $0x7d0] sm:$0xff] }
 0x119   :  { %982 = vmatprep.subr.mxu0 %v379_v57  ;;  %1053 = vmatprep.subr.mxu1 %v635_v58  ;;  %v786_v57 = vld [vmem:[#allocation8 + $0xfd0] sm:$0xff]  ;;  %v523_v58 = vld [vmem:[#allocation8 + $0x798] sm:$0xff] }
 0x11a   :  { %983 = vmatpush1.msra.mxu0 %v378_v59  ;;  %1054 = vmatpush1.msra.mxu1 %v634_v60  ;;  %v779_v59 = vld [vmem:[#allocation8 + $0xf98] sm:$0xff]  ;;  %v522_v60 = vld [vmem:[#allocation8 + $0x790] sm:$0xff] }
 0x11b   :  { %984 = vmatprep.subr.mxu0 %v371_v61  ;;  %1055 = vmatprep.subr.mxu1 %v627_v62  ;;  %v778_v61 = vld [vmem:[#allocation8 + $0xf90] sm:$0xff]  ;;  %v515_v62 = vld [vmem:[#allocation8 + $0x758] sm:$0xff] }
 0x11c   :  { %985 = vmatpush1.msra.mxu0 %v370_v63  ;;  %1056 = vmatpush1.msra.mxu1 %v626_v0  ;;  %v771_v63 = vld [vmem:[#allocation8 + $0xf58] sm:$0xff]  ;;  %v514_v0 = vld [vmem:[#allocation8 + $0x750] sm:$0xff] }
 0x11d   :  { %986 = vmatprep.subr.mxu0 %v363_v1  ;;  %1057 = vmatprep.subr.mxu1 %v619_v2  ;;  %v770_v1 = vld [vmem:[#allocation8 + $0xf50] sm:$0xff]  ;;  %v507_v2 = vld [vmem:[#allocation8 + $0x718] sm:$0xff] }
 0x11e   :  { %987 = vmatpush1.msra.mxu0 %v362_v3  ;;  %1058 = vmatpush1.msra.mxu1 %v618_v4  ;;  %v763_v3 = vld [vmem:[#allocation8 + $0xf18] sm:$0xff]  ;;  %v506_v4 = vld [vmem:[#allocation8 + $0x710] sm:$0xff] }
 0x11f   :  { %988 = vmatprep.subr.mxu0 %v355_v5  ;;  %1059 = vmatprep.subr.mxu1 %v611_v6  ;;  %v762_v5 = vld [vmem:[#allocation8 + $0xf10] sm:$0xff]  ;;  %v499_v6 = vld [vmem:[#allocation8 + $0x6d8] sm:$0xff] }
 0x120   :  { %989 = vmatpush1.msra.mxu0 %v354_v7  ;;  %1060 = vmatpush1.msra.mxu1 %v610_v8  ;;  %v755_v7 = vld [vmem:[#allocation8 + $0xed8] sm:$0xff]  ;;  %v498_v8 = vld [vmem:[#allocation8 + $0x6d0] sm:$0xff] }
 0x121   :  { %990 = vmatprep.subr.mxu0 %v347_v9  ;;  %1061 = vmatprep.subr.mxu1 %v603_v10  ;;  %v754_v9 = vld [vmem:[#allocation8 + $0xed0] sm:$0xff]  ;;  %v491_v10 = vld [vmem:[#allocation8 + $0x698] sm:$0xff] }
 0x122   :  { %991 = vmatpush1.msra.mxu0 %v346_v11  ;;  %1062 = vmatpush1.msra.mxu1 %v602_v12  ;;  %v747_v11 = vld [vmem:[#allocation8 + $0xe98] sm:$0xff]  ;;  %v490_v12 = vld [vmem:[#allocation8 + $0x690] sm:$0xff] }
 0x123   :  { %992 = vmatprep.subr.mxu0 %v339_v13  ;;  %1063 = vmatprep.subr.mxu1 %v595_v14  ;;  %v746_v13 = vld [vmem:[#allocation8 + $0xe90] sm:$0xff]  ;;  %v483_v14 = vld [vmem:[#allocation8 + $0x658] sm:$0xff] }
 0x124   :  { %993 = vmatpush1.msra.mxu0 %v338_v15  ;;  %1064 = vmatpush1.msra.mxu1 %v594_v16  ;;  %v739_v15 = vld [vmem:[#allocation8 + $0xe58] sm:$0xff]  ;;  %v482_v16 = vld [vmem:[#allocation8 + $0x650] sm:$0xff] }
 0x125   :  { %994 = vmatprep.subr.mxu0 %v331_v17  ;;  %1065 = vmatprep.subr.mxu1 %v587_v18  ;;  %v738_v17 = vld [vmem:[#allocation8 + $0xe50] sm:$0xff]  ;;  %v475_v18 = vld [vmem:[#allocation8 + $0x618] sm:$0xff] }
 0x126   :  { %995 = vmatpush1.msra.mxu0 %v330_v19  ;;  %1066 = vmatpush1.msra.mxu1 %v586_v20  ;;  %v731_v19 = vld [vmem:[#allocation8 + $0xe18] sm:$0xff]  ;;  %v474_v20 = vld [vmem:[#allocation8 + $0x610] sm:$0xff] }
 0x127   :  { %996 = vmatprep.subr.mxu0 %v323_v24  ;;  %1067 = vmatprep.subr.mxu1 %v579_v27  ;;  %v730_v24 = vld [vmem:[#allocation8 + $0xe10] sm:$0xff]  ;;  %v467_v27 = vld [vmem:[#allocation8 + $0x5d8] sm:$0xff] }
 0x128   :  { %997 = vmatpush1.msra.mxu0 %v322_v28  ;;  %1068 = vmatpush1.msra.mxu1 %v578_v29  ;;  %v723_v28 = vld [vmem:[#allocation8 + $0xdd8] sm:$0xff]  ;;  %v466_v29 = vld [vmem:[#allocation8 + $0x5d0] sm:$0xff] }
 0x129   :  { %998 = vmatprep.subr.mxu0 %v315_v30  ;;  %1069 = vmatprep.subr.mxu1 %v571_v31  ;;  %v722_v30 = vld [vmem:[#allocation8 + $0xdd0] sm:$0xff]  ;;  %v459_v31 = vld [vmem:[#allocation8 + $0x598] sm:$0xff] }
 0x12a   :  { %999 = vmatpush1.msra.mxu0 %v314_v32  ;;  %1070 = vmatpush1.msra.mxu1 %v570_v33  ;;  %v715_v32 = vld [vmem:[#allocation8 + $0xd98] sm:$0xff]  ;;  %v458_v33 = vld [vmem:[#allocation8 + $0x590] sm:$0xff] }
 0x12b   :  { %1000 = vmatprep.subr.mxu0 %v307_v34  ;;  %1071 = vmatprep.subr.mxu1 %v563_v35  ;;  %v714_v34 = vld [vmem:[#allocation8 + $0xd90] sm:$0xff]  ;;  %v451_v35 = vld [vmem:[#allocation8 + $0x558] sm:$0xff] }
 0x12c   :  { %1001 = vmatpush1.msra.mxu0 %v306_v36  ;;  %1072 = vmatpush1.msra.mxu1 %v562_v37  ;;  %v707_v36 = vld [vmem:[#allocation8 + $0xd58] sm:$0xff]  ;;  %v450_v37 = vld [vmem:[#allocation8 + $0x550] sm:$0xff] }
 0x12d   :  { %1002 = vmatprep.subr.mxu0 %v299_v38  ;;  %1073 = vmatprep.subr.mxu1 %v555_v39  ;;  %v706_v38 = vld [vmem:[#allocation8 + $0xd50] sm:$0xff]  ;;  %v443_v39 = vld [vmem:[#allocation8 + $0x518] sm:$0xff] }
 0x12e   :  { %1003 = vmatpush1.msra.mxu0 %v298_v40  ;;  %1074 = vmatpush1.msra.mxu1 %v554_v41  ;;  %v699_v40 = vld [vmem:[#allocation8 + $0xd18] sm:$0xff]  ;;  %v442_v41 = vld [vmem:[#allocation8 + $0x510] sm:$0xff] }
 0x12f   :  { %1004 = vmatprep.subr.mxu0 %v291_v42  ;;  %1075 = vmatprep.subr.mxu1 %v547_v45  ;;  %v698_v42 = vld [vmem:[#allocation8 + $0xd10] sm:$0xff]  ;;  %v435_v45 = vld [vmem:[#allocation8 + $0x4d8] sm:$0xff] }
 0x130   :  { %1005 = vmatpush1.msra.mxu0 %v290_v46  ;;  %1076 = vmatpush1.msra.mxu1 %v546_v49  ;;  %v691_v46 = vld [vmem:[#allocation8 + $0xcd8] sm:$0xff]  ;;  %v434_v49 = vld [vmem:[#allocation8 + $0x4d0] sm:$0xff] }
 0x131   :  { %1006 = vmatprep.subr.mxu0 %v283_v50  ;;  %1077 = vmatprep.subr.mxu1 %v539_v51  ;;  %v690_v50 = vld [vmem:[#allocation8 + $0xcd0] sm:$0xff]  ;;  %v427_v51 = vld [vmem:[#allocation8 + $0x498] sm:$0xff] }
 0x132   :  { %1007 = vmatpush1.msra.mxu0 %v282_v52  ;;  %1078 = vmatpush1.msra.mxu1 %v538_v53  ;;  %v683_v52 = vld [vmem:[#allocation8 + $0xc98] sm:$0xff]  ;;  %v426_v53 = vld [vmem:[#allocation8 + $0x490] sm:$0xff] }
 0x133   :  { %1008 = vmatprep.subr.mxu0 %v531_v54  ;;  %1079 = vmatprep.subr.mxu1 %v787_v55  ;;  %v682_v54 = vld [vmem:[#allocation8 + $0xc90] sm:$0xff]  ;;  %v419_v55 = vld [vmem:[#allocation8 + $0x458] sm:$0xff] }
 0x134   :  { %1009 = vmatpush2.msra.mxu0 %v530_v56  ;;  %1080 = vmatpush2.msra.mxu1 %v786_v57  ;;  %v675_v56 = vld [vmem:[#allocation8 + $0xc58] sm:$0xff]  ;;  %v418_v57 = vld [vmem:[#allocation8 + $0x450] sm:$0xff] }
 0x135   :  { %1010 = vmatprep.subr.mxu0 %v523_v58  ;;  %1081 = vmatprep.subr.mxu1 %v779_v59  ;;  %v674_v58 = vld [vmem:[#allocation8 + $0xc50] sm:$0xff]  ;;  %v411_v59 = vld [vmem:[#allocation8 + $0x418] sm:$0xff] }
 0x136   :  { %1011 = vmatpush2.msra.mxu0 %v522_v60  ;;  %1082 = vmatpush2.msra.mxu1 %v778_v61  ;;  %v667_v60 = vld [vmem:[#allocation8 + $0xc18] sm:$0xff]  ;;  %v410_v61 = vld [vmem:[#allocation8 + $0x410] sm:$0xff] }
 0x137   :  { %1012 = vmatprep.subr.mxu0 %v515_v62  ;;  %1083 = vmatprep.subr.mxu1 %v771_v63  ;;  %v666_v62 = vld [vmem:[#allocation8 + $0xc10] sm:$0xff]  ;;  %v405_v63 = vld [vmem:[#allocation8 + $0x3e8] sm:$0xff] }
 0x138   :  { %1013 = vmatpush2.msra.mxu0 %v514_v0  ;;  %1084 = vmatpush2.msra.mxu1 %v770_v1  ;;  %v661_v0 = vld [vmem:[#allocation8 + $0xbe8] sm:$0xff]  ;;  %v404_v1 = vld [vmem:[#allocation8 + $0x3e0] sm:$0xff] }
 0x139   :  { %1014 = vmatprep.subr.mxu0 %v507_v2  ;;  %1085 = vmatprep.subr.mxu1 %v763_v3  ;;  %v660_v2 = vld [vmem:[#allocation8 + $0xbe0] sm:$0xff]  ;;  %v397_v3 = vld [vmem:[#allocation8 + $0x3a8] sm:$0xff] }
 0x13a   :  { %1015 = vmatpush2.msra.mxu0 %v506_v4  ;;  %1086 = vmatpush2.msra.mxu1 %v762_v5  ;;  %v653_v4 = vld [vmem:[#allocation8 + $0xba8] sm:$0xff]  ;;  %v396_v5 = vld [vmem:[#allocation8 + $0x3a0] sm:$0xff] }
 0x13b   :  { %1016 = vmatprep.subr.mxu0 %v499_v6  ;;  %1087 = vmatprep.subr.mxu1 %v755_v7  ;;  %v652_v6 = vld [vmem:[#allocation8 + $0xba0] sm:$0xff]  ;;  %v389_v7 = vld [vmem:[#allocation8 + $0x368] sm:$0xff] }
 0x13c   :  { %1017 = vmatpush2.msra.mxu0 %v498_v8  ;;  %1088 = vmatpush2.msra.mxu1 %v754_v9  ;;  %v645_v8 = vld [vmem:[#allocation8 + $0xb68] sm:$0xff]  ;;  %v388_v9 = vld [vmem:[#allocation8 + $0x360] sm:$0xff] }
 0x13d   :  { %1018 = vmatprep.subr.mxu0 %v491_v10  ;;  %1089 = vmatprep.subr.mxu1 %v747_v11  ;;  %v644_v10 = vld [vmem:[#allocation8 + $0xb60] sm:$0xff]  ;;  %v381_v11 = vld [vmem:[#allocation8 + $0x328] sm:$0xff] }
 0x13e   :  { %1019 = vmatpush2.msra.mxu0 %v490_v12  ;;  %1090 = vmatpush2.msra.mxu1 %v746_v13  ;;  %v637_v12 = vld [vmem:[#allocation8 + $0xb28] sm:$0xff]  ;;  %v380_v13 = vld [vmem:[#allocation8 + $0x320] sm:$0xff] }
 0x13f   :  { %1020 = vmatprep.subr.mxu0 %v483_v14  ;;  %1091 = vmatprep.subr.mxu1 %v739_v15  ;;  %v636_v14 = vld [vmem:[#allocation8 + $0xb20] sm:$0xff]  ;;  %v373_v15 = vld [vmem:[#allocation8 + $0x2e8] sm:$0xff] }
 0x140   :  { %1021 = vmatpush2.msra.mxu0 %v482_v16  ;;  %1092 = vmatpush2.msra.mxu1 %v738_v17  ;;  %v629_v16 = vld [vmem:[#allocation8 + $0xae8] sm:$0xff]  ;;  %v372_v17 = vld [vmem:[#allocation8 + $0x2e0] sm:$0xff] }
 0x141   :  { %1022 = vmatprep.subr.mxu0 %v475_v18  ;;  %1093 = vmatprep.subr.mxu1 %v731_v19  ;;  %v628_v18 = vld [vmem:[#allocation8 + $0xae0] sm:$0xff]  ;;  %v365_v19 = vld [vmem:[#allocation8 + $0x2a8] sm:$0xff] }
 0x142   :  { %1023 = vmatpush2.msra.mxu0 %v474_v20  ;;  %1094 = vmatpush2.msra.mxu1 %v730_v24  ;;  %v621_v20 = vld [vmem:[#allocation8 + $0xaa8] sm:$0xff]  ;;  %v364_v24 = vld [vmem:[#allocation8 + $0x2a0] sm:$0xff] }
 0x143   :  { %1024 = vmatprep.subr.mxu0 %v467_v27  ;;  %1095 = vmatprep.subr.mxu1 %v723_v28  ;;  %v620_v27 = vld [vmem:[#allocation8 + $0xaa0] sm:$0xff]  ;;  %v357_v28 = vld [vmem:[#allocation8 + $0x268] sm:$0xff] }
 0x144   :  { %1025 = vmatpush2.msra.mxu0 %v466_v29  ;;  %1096 = vmatpush2.msra.mxu1 %v722_v30  ;;  %v613_v29 = vld [vmem:[#allocation8 + $0xa68] sm:$0xff]  ;;  %v356_v30 = vld [vmem:[#allocation8 + $0x260] sm:$0xff] }
 0x145   :  { %1026 = vmatprep.subr.mxu0 %v459_v31  ;;  %1097 = vmatprep.subr.mxu1 %v715_v32  ;;  %v612_v31 = vld [vmem:[#allocation8 + $0xa60] sm:$0xff]  ;;  %v349_v32 = vld [vmem:[#allocation8 + $0x228] sm:$0xff] }
 0x146   :  { %1027 = vmatpush2.msra.mxu0 %v458_v33  ;;  %1098 = vmatpush2.msra.mxu1 %v714_v34  ;;  %v605_v33 = vld [vmem:[#allocation8 + $0xa28] sm:$0xff]  ;;  %v348_v34 = vld [vmem:[#allocation8 + $0x220] sm:$0xff] }
 0x147   :  { %1028 = vmatprep.subr.mxu0 %v451_v35  ;;  %1099 = vmatprep.subr.mxu1 %v707_v36  ;;  %v604_v35 = vld [vmem:[#allocation8 + $0xa20] sm:$0xff]  ;;  %v341_v36 = vld [vmem:[#allocation8 + $0x1e8] sm:$0xff] }
 0x148   :  { %1029 = vmatpush2.msra.mxu0 %v450_v37  ;;  %1100 = vmatpush2.msra.mxu1 %v706_v38  ;;  %v597_v37 = vld [vmem:[#allocation8 + $0x9e8] sm:$0xff]  ;;  %v340_v38 = vld [vmem:[#allocation8 + $0x1e0] sm:$0xff] }
 0x149   :  { %1030 = vmatprep.subr.mxu0 %v443_v39  ;;  %1101 = vmatprep.subr.mxu1 %v699_v40  ;;  %v596_v39 = vld [vmem:[#allocation8 + $0x9e0] sm:$0xff]  ;;  %v333_v40 = vld [vmem:[#allocation8 + $0x1a8] sm:$0xff] }
 0x14a   :  { %1031 = vmatpush2.msra.mxu0 %v442_v41  ;;  %1102 = vmatpush2.msra.mxu1 %v698_v42  ;;  %v589_v41 = vld [vmem:[#allocation8 + $0x9a8] sm:$0xff]  ;;  %v332_v42 = vld [vmem:[#allocation8 + $0x1a0] sm:$0xff] }
 0x14b   :  { %1032 = vmatprep.subr.mxu0 %v435_v45  ;;  %1103 = vmatprep.subr.mxu1 %v691_v46  ;;  %v588_v45 = vld [vmem:[#allocation8 + $0x9a0] sm:$0xff]  ;;  %v325_v46 = vld [vmem:[#allocation8 + $0x168] sm:$0xff] }
 0x14c   :  { %1033 = vmatpush2.msra.mxu0 %v434_v49  ;;  %1104 = vmatpush2.msra.mxu1 %v690_v50  ;;  %v581_v49 = vld [vmem:[#allocation8 + $0x968] sm:$0xff]  ;;  %v324_v50 = vld [vmem:[#allocation8 + $0x160] sm:$0xff] }
 0x14d   :  { %1034 = vmatprep.subr.mxu0 %v427_v51  ;;  %1105 = vmatprep.subr.mxu1 %v683_v52  ;;  %v580_v51 = vld [vmem:[#allocation8 + $0x960] sm:$0xff]  ;;  %v317_v52 = vld [vmem:[#allocation8 + $0x128] sm:$0xff] }
 0x14e   :  { %1035 = vmatpush2.msra.mxu0 %v426_v53  ;;  %1106 = vmatpush2.msra.mxu1 %v682_v54  ;;  %v573_v53 = vld [vmem:[#allocation8 + $0x928] sm:$0xff]  ;;  %v316_v54 = vld [vmem:[#allocation8 + $0x120] sm:$0xff] }
 0x14f   :  { %1036 = vmatprep.subr.mxu0 %v419_v55  ;;  %1107 = vmatprep.subr.mxu1 %v675_v56  ;;  %v572_v55 = vld [vmem:[#allocation8 + $0x920] sm:$0xff]  ;;  %v309_v56 = vld [vmem:[#allocation8 + $0xe8] sm:$0xff] }
 0x150   :  { %1037 = vmatpush2.msra.mxu0 %v418_v57  ;;  %1108 = vmatpush2.msra.mxu1 %v674_v58  ;;  %v565_v57 = vld [vmem:[#allocation8 + $0x8e8] sm:$0xff]  ;;  %v308_v58 = vld [vmem:[#allocation8 + $0xe0] sm:$0xff] }
 0x151   :  { %1038 = vmatprep.subr.mxu0 %v411_v59  ;;  %1109 = vmatprep.subr.mxu1 %v667_v60  ;;  %v564_v59 = vld [vmem:[#allocation8 + $0x8e0] sm:$0xff]  ;;  %v301_v60 = vld [vmem:[#allocation8 + $0xa8] sm:$0xff] }
 0x152   :  { %1039 = vmatpush2.msra.mxu0 %v410_v61  ;;  %1110 = vmatpush2.msra.mxu1 %v666_v62  ;;  %v557_v61 = vld [vmem:[#allocation8 + $0x8a8] sm:$0xff]  ;;  %v300_v62 = vld [vmem:[#allocation8 + $0xa0] sm:$0xff] }
 0x153   :  { %1041 = vmatmul.mubr.f32.vlgmr.msra.gmra.mxu0 %v1733_v47  ;;  %1112 = vmatmul.mubr.f32.vlgmr.msra.gmra.mxu1 %v1735_v48 }
 0x154   :  { %1118 = vmatprep.subr.mxu0 %v405_v63  ;;  %1189 = vmatprep.subr.mxu1 %v661_v0  ;;  %v556_v63 = vld [vmem:[#allocation8 + $0x8a0] sm:$0xff]  ;;  %v293_v0 = vld [vmem:[#allocation8 + $0x68] sm:$0xff] }
 0x155   :  { %1119 = vmatpush1.msra.mxu0 %v404_v1  ;;  %1182 = vmatprep.mubr.f32.mxu0 %v1727_v43  ;;  %v549_v1 = vld [vmem:[#allocation8 + $0x868] sm:$0xff] }
 0x156   :  { %1190 = vmatpush1.msra.mxu1 %v660_v2  ;;  %1253 = vmatprep.mubr.f32.mxu1 %v1729_v44  ;;  %v292_v2 = vld [vmem:[#allocation8 + $0x60] sm:$0xff] }
 0x157   :  { %1120 = vmatprep.subr.mxu0 %v397_v3  ;;  %1191 = vmatprep.subr.mxu1 %v653_v4  ;;  %v548_v3 = vld [vmem:[#allocation8 + $0x860] sm:$0xff]  ;;  %v285_v4 = vld [vmem:[#allocation8 + $0x28] sm:$0xff] }
 0x158   :  { %1121 = vmatpush1.msra.mxu0 %v396_v5  ;;  %1192 = vmatpush1.msra.mxu1 %v652_v6  ;;  %v541_v5 = vld [vmem:[#allocation8 + $0x828] sm:$0xff]  ;;  %v284_v6 = vld [vmem:[#allocation8 + $0x20] sm:$0xff] }
 0x159   :  { %1122 = vmatprep.subr.mxu0 %v389_v7  ;;  %1193 = vmatprep.subr.mxu1 %v645_v8  ;;  %v540_v7 = vld [vmem:[#allocation8 + $0x820] sm:$0xff]  ;;  %v533_v8 = vld [vmem:[#allocation8 + $0x7e8] sm:$0xff] }
 0x15a   :  { %1123 = vmatpush1.msra.mxu0 %v388_v9  ;;  %1194 = vmatpush1.msra.mxu1 %v644_v10  ;;  %v789_v9 = vld [vmem:[#allocation8 + $0xfe8] sm:$0xff]  ;;  %v532_v10 = vld [vmem:[#allocation8 + $0x7e0] sm:$0xff] }
 0x15b   :  { %1124 = vmatprep.subr.mxu0 %v381_v11  ;;  %1195 = vmatprep.subr.mxu1 %v637_v12  ;;  %v788_v11 = vld [vmem:[#allocation8 + $0xfe0] sm:$0xff]  ;;  %v525_v12 = vld [vmem:[#allocation8 + $0x7a8] sm:$0xff] }
 0x15c   :  { %1125 = vmatpush1.msra.mxu0 %v380_v13  ;;  %1196 = vmatpush1.msra.mxu1 %v636_v14  ;;  %v781_v13 = vld [vmem:[#allocation8 + $0xfa8] sm:$0xff]  ;;  %v524_v14 = vld [vmem:[#allocation8 + $0x7a0] sm:$0xff] }
 0x15d   :  { %1126 = vmatprep.subr.mxu0 %v373_v15  ;;  %1197 = vmatprep.subr.mxu1 %v629_v16  ;;  %v780_v15 = vld [vmem:[#allocation8 + $0xfa0] sm:$0xff]  ;;  %v517_v16 = vld [vmem:[#allocation8 + $0x768] sm:$0xff] }
 0x15e   :  { %1127 = vmatpush1.msra.mxu0 %v372_v17  ;;  %1198 = vmatpush1.msra.mxu1 %v628_v18  ;;  %v773_v17 = vld [vmem:[#allocation8 + $0xf68] sm:$0xff]  ;;  %v516_v18 = vld [vmem:[#allocation8 + $0x760] sm:$0xff] }
 0x15f   :  { %1128 = vmatprep.subr.mxu0 %v365_v19  ;;  %1199 = vmatprep.subr.mxu1 %v621_v20  ;;  %v772_v19 = vld [vmem:[#allocation8 + $0xf60] sm:$0xff]  ;;  %v509_v20 = vld [vmem:[#allocation8 + $0x728] sm:$0xff] }
 0x160   :  { %1129 = vmatpush1.msra.mxu0 %v364_v24  ;;  %1200 = vmatpush1.msra.mxu1 %v620_v27  ;;  %v765_v24 = vld [vmem:[#allocation8 + $0xf28] sm:$0xff]  ;;  %v508_v27 = vld [vmem:[#allocation8 + $0x720] sm:$0xff] }
 0x161   :  { %1130 = vmatprep.subr.mxu0 %v357_v28  ;;  %1201 = vmatprep.subr.mxu1 %v613_v29  ;;  %v764_v28 = vld [vmem:[#allocation8 + $0xf20] sm:$0xff]  ;;  %v501_v29 = vld [vmem:[#allocation8 + $0x6e8] sm:$0xff] }
 0x162   :  { %1131 = vmatpush1.msra.mxu0 %v356_v30  ;;  %1202 = vmatpush1.msra.mxu1 %v612_v31  ;;  %v757_v30 = vld [vmem:[#allocation8 + $0xee8] sm:$0xff]  ;;  %v500_v31 = vld [vmem:[#allocation8 + $0x6e0] sm:$0xff] }
 0x163   :  { %1132 = vmatprep.subr.mxu0 %v349_v32  ;;  %1203 = vmatprep.subr.mxu1 %v605_v33  ;;  %v756_v32 = vld [vmem:[#allocation8 + $0xee0] sm:$0xff]  ;;  %v493_v33 = vld [vmem:[#allocation8 + $0x6a8] sm:$0xff] }
 0x164   :  { %1133 = vmatpush1.msra.mxu0 %v348_v34  ;;  %1204 = vmatpush1.msra.mxu1 %v604_v35  ;;  %v749_v34 = vld [vmem:[#allocation8 + $0xea8] sm:$0xff]  ;;  %v492_v35 = vld [vmem:[#allocation8 + $0x6a0] sm:$0xff] }
 0x165   :  { %1134 = vmatprep.subr.mxu0 %v341_v36  ;;  %1205 = vmatprep.subr.mxu1 %v597_v37  ;;  %v748_v36 = vld [vmem:[#allocation8 + $0xea0] sm:$0xff]  ;;  %v485_v37 = vld [vmem:[#allocation8 + $0x668] sm:$0xff] }
 0x166   :  { %1135 = vmatpush1.msra.mxu0 %v340_v38  ;;  %1206 = vmatpush1.msra.mxu1 %v596_v39  ;;  %v741_v38 = vld [vmem:[#allocation8 + $0xe68] sm:$0xff]  ;;  %v484_v39 = vld [vmem:[#allocation8 + $0x660] sm:$0xff] }
 0x167   :  { %1136 = vmatprep.subr.mxu0 %v333_v40  ;;  %1207 = vmatprep.subr.mxu1 %v589_v41  ;;  %v740_v40 = vld [vmem:[#allocation8 + $0xe60] sm:$0xff]  ;;  %v477_v41 = vld [vmem:[#allocation8 + $0x628] sm:$0xff] }
 0x168   :  { %1137 = vmatpush1.msra.mxu0 %v332_v42  ;;  %1208 = vmatpush1.msra.mxu1 %v588_v45  ;;  %v733_v42 = vld [vmem:[#allocation8 + $0xe28] sm:$0xff]  ;;  %v476_v45 = vld [vmem:[#allocation8 + $0x620] sm:$0xff] }
 0x169   :  { %1138 = vmatprep.subr.mxu0 %v325_v46  ;;  %1209 = vmatprep.subr.mxu1 %v581_v49  ;;  %v732_v46 = vld [vmem:[#allocation8 + $0xe20] sm:$0xff]  ;;  %v469_v49 = vld [vmem:[#allocation8 + $0x5e8] sm:$0xff] }
 0x16a   :  { %1139 = vmatpush1.msra.mxu0 %v324_v50  ;;  %1210 = vmatpush1.msra.mxu1 %v580_v51  ;;  %v725_v50 = vld [vmem:[#allocation8 + $0xde8] sm:$0xff]  ;;  %v468_v51 = vld [vmem:[#allocation8 + $0x5e0] sm:$0xff] }
 0x16b   :  { %1140 = vmatprep.subr.mxu0 %v317_v52  ;;  %1211 = vmatprep.subr.mxu1 %v573_v53  ;;  %v724_v52 = vld [vmem:[#allocation8 + $0xde0] sm:$0xff]  ;;  %v461_v53 = vld [vmem:[#allocation8 + $0x5a8] sm:$0xff] }
 0x16c   :  { %1141 = vmatpush1.msra.mxu0 %v316_v54  ;;  %1212 = vmatpush1.msra.mxu1 %v572_v55  ;;  %v717_v54 = vld [vmem:[#allocation8 + $0xda8] sm:$0xff]  ;;  %v460_v55 = vld [vmem:[#allocation8 + $0x5a0] sm:$0xff] }
 0x16d   :  { %1142 = vmatprep.subr.mxu0 %v309_v56  ;;  %1213 = vmatprep.subr.mxu1 %v565_v57  ;;  %v716_v56 = vld [vmem:[#allocation8 + $0xda0] sm:$0xff]  ;;  %v453_v57 = vld [vmem:[#allocation8 + $0x568] sm:$0xff] }
 0x16e   :  { %1143 = vmatpush1.msra.mxu0 %v308_v58  ;;  %1214 = vmatpush1.msra.mxu1 %v564_v59  ;;  %v709_v58 = vld [vmem:[#allocation8 + $0xd68] sm:$0xff]  ;;  %v452_v59 = vld [vmem:[#allocation8 + $0x560] sm:$0xff] }
 0x16f   :  { %1144 = vmatprep.subr.mxu0 %v301_v60  ;;  %1215 = vmatprep.subr.mxu1 %v557_v61  ;;  %v708_v60 = vld [vmem:[#allocation8 + $0xd60] sm:$0xff]  ;;  %v445_v61 = vld [vmem:[#allocation8 + $0x528] sm:$0xff] }
 0x170   :  { %1145 = vmatpush1.msra.mxu0 %v300_v62  ;;  %1216 = vmatpush1.msra.mxu1 %v556_v63  ;;  %v701_v62 = vld [vmem:[#allocation8 + $0xd28] sm:$0xff]  ;;  %v444_v63 = vld [vmem:[#allocation8 + $0x520] sm:$0xff] }
 0x171   :  { %1146 = vmatprep.subr.mxu0 %v293_v0  ;;  %1217 = vmatprep.subr.mxu1 %v549_v1  ;;  %v700_v0 = vld [vmem:[#allocation8 + $0xd20] sm:$0xff]  ;;  %v437_v1 = vld [vmem:[#allocation8 + $0x4e8] sm:$0xff] }
 0x172   :  { %1147 = vmatpush1.msra.mxu0 %v292_v2  ;;  %1218 = vmatpush1.msra.mxu1 %v548_v3  ;;  %v693_v2 = vld [vmem:[#allocation8 + $0xce8] sm:$0xff]  ;;  %v436_v3 = vld [vmem:[#allocation8 + $0x4e0] sm:$0xff] }
 0x173   :  { %1148 = vmatprep.subr.mxu0 %v285_v4  ;;  %1219 = vmatprep.subr.mxu1 %v541_v5  ;;  %v692_v4 = vld [vmem:[#allocation8 + $0xce0] sm:$0xff]  ;;  %v429_v5 = vld [vmem:[#allocation8 + $0x4a8] sm:$0xff] }
 0x174   :  { %1149 = vmatpush1.msra.mxu0 %v284_v6  ;;  %1220 = vmatpush1.msra.mxu1 %v540_v7  ;;  %v685_v6 = vld [vmem:[#allocation8 + $0xca8] sm:$0xff]  ;;  %v428_v7 = vld [vmem:[#allocation8 + $0x4a0] sm:$0xff] }
 0x175   :  { %1150 = vmatprep.subr.mxu0 %v533_v8  ;;  %1221 = vmatprep.subr.mxu1 %v789_v9  ;;  %v684_v8 = vld [vmem:[#allocation8 + $0xca0] sm:$0xff]  ;;  %v421_v9 = vld [vmem:[#allocation8 + $0x468] sm:$0xff] }
 0x176   :  { %1151 = vmatpush2.msra.mxu0 %v532_v10  ;;  %1222 = vmatpush2.msra.mxu1 %v788_v11  ;;  %v677_v10 = vld [vmem:[#allocation8 + $0xc68] sm:$0xff]  ;;  %v420_v11 = vld [vmem:[#allocation8 + $0x460] sm:$0xff] }
 0x177   :  { %1152 = vmatprep.subr.mxu0 %v525_v12  ;;  %1223 = vmatprep.subr.mxu1 %v781_v13  ;;  %v676_v12 = vld [vmem:[#allocation8 + $0xc60] sm:$0xff]  ;;  %v413_v13 = vld [vmem:[#allocation8 + $0x428] sm:$0xff] }
 0x178   :  { %1153 = vmatpush2.msra.mxu0 %v524_v14  ;;  %1224 = vmatpush2.msra.mxu1 %v780_v15  ;;  %v669_v14 = vld [vmem:[#allocation8 + $0xc28] sm:$0xff]  ;;  %v412_v15 = vld [vmem:[#allocation8 + $0x420] sm:$0xff] }
 0x179   :  { %1154 = vmatprep.subr.mxu0 %v517_v16  ;;  %1225 = vmatprep.subr.mxu1 %v773_v17  ;;  %v668_v16 = vld [vmem:[#allocation8 + $0xc20] sm:$0xff]  ;;  %v407_v17 = vld [vmem:[#allocation8 + $0x3f8] sm:$0xff] }
 0x17a   :  { %1155 = vmatpush2.msra.mxu0 %v516_v18  ;;  %1226 = vmatpush2.msra.mxu1 %v772_v19  ;;  %v663_v18 = vld [vmem:[#allocation8 + $0xbf8] sm:$0xff]  ;;  %v406_v19 = vld [vmem:[#allocation8 + $0x3f0] sm:$0xff] }
 0x17b   :  { %1156 = vmatprep.subr.mxu0 %v509_v20  ;;  %1227 = vmatprep.subr.mxu1 %v765_v24  ;;  %v662_v20 = vld [vmem:[#allocation8 + $0xbf0] sm:$0xff]  ;;  %v399_v24 = vld [vmem:[#allocation8 + $0x3b8] sm:$0xff] }
 0x17c   :  { %1157 = vmatpush2.msra.mxu0 %v508_v27  ;;  %1228 = vmatpush2.msra.mxu1 %v764_v28  ;;  %v655_v27 = vld [vmem:[#allocation8 + $0xbb8] sm:$0xff]  ;;  %v398_v28 = vld [vmem:[#allocation8 + $0x3b0] sm:$0xff] }
 0x17d   :  { %1158 = vmatprep.subr.mxu0 %v501_v29  ;;  %1229 = vmatprep.subr.mxu1 %v757_v30  ;;  %v654_v29 = vld [vmem:[#allocation8 + $0xbb0] sm:$0xff]  ;;  %v391_v30 = vld [vmem:[#allocation8 + $0x378] sm:$0xff] }
 0x17e   :  { %1159 = vmatpush2.msra.mxu0 %v500_v31  ;;  %1230 = vmatpush2.msra.mxu1 %v756_v32  ;;  %v647_v31 = vld [vmem:[#allocation8 + $0xb78] sm:$0xff]  ;;  %v390_v32 = vld [vmem:[#allocation8 + $0x370] sm:$0xff] }
 0x17f   :  { %1160 = vmatprep.subr.mxu0 %v493_v33  ;;  %1231 = vmatprep.subr.mxu1 %v749_v34  ;;  %v646_v33 = vld [vmem:[#allocation8 + $0xb70] sm:$0xff]  ;;  %v383_v34 = vld [vmem:[#allocation8 + $0x338] sm:$0xff] }
 0x180   :  { %1161 = vmatpush2.msra.mxu0 %v492_v35  ;;  %1232 = vmatpush2.msra.mxu1 %v748_v36  ;;  %v639_v35 = vld [vmem:[#allocation8 + $0xb38] sm:$0xff]  ;;  %v382_v36 = vld [vmem:[#allocation8 + $0x330] sm:$0xff] }
 0x181   :  { %1162 = vmatprep.subr.mxu0 %v485_v37  ;;  %1233 = vmatprep.subr.mxu1 %v741_v38  ;;  %v638_v37 = vld [vmem:[#allocation8 + $0xb30] sm:$0xff]  ;;  %v631_v38 = vld [vmem:[#allocation8 + $0xaf8] sm:$0xff] }
 0x182   :  { %1163 = vmatpush2.msra.mxu0 %v484_v39  ;;  %1234 = vmatpush2.msra.mxu1 %v740_v40  ;;  %v630_v39 = vld [vmem:[#allocation8 + $0xaf0] sm:$0xff]  ;;  %v367_v40 = vld [vmem:[#allocation8 + $0x2b8] sm:$0xff] }
 0x183   :  { %1164 = vmatprep.subr.mxu0 %v477_v41  ;;  %1235 = vmatprep.subr.mxu1 %v733_v42  ;;  %v623_v41 = vld [vmem:[#allocation8 + $0xab8] sm:$0xff]  ;;  %v366_v42 = vld [vmem:[#allocation8 + $0x2b0] sm:$0xff] }
 0x184   :  { %1165 = vmatpush2.msra.mxu0 %v476_v45  ;;  %1236 = vmatpush2.msra.mxu1 %v732_v46  ;;  %v622_v45 = vld [vmem:[#allocation8 + $0xab0] sm:$0xff]  ;;  %v359_v46 = vld [vmem:[#allocation8 + $0x278] sm:$0xff] }
 0x185   :  { %1166 = vmatprep.subr.mxu0 %v469_v49  ;;  %1237 = vmatprep.subr.mxu1 %v725_v50  ;;  %v615_v49 = vld [vmem:[#allocation8 + $0xa78] sm:$0xff]  ;;  %v358_v50 = vld [vmem:[#allocation8 + $0x270] sm:$0xff] }
 0x186   :  { %1167 = vmatpush2.msra.mxu0 %v468_v51  ;;  %1238 = vmatpush2.msra.mxu1 %v724_v52  ;;  %v614_v51 = vld [vmem:[#allocation8 + $0xa70] sm:$0xff]  ;;  %v351_v52 = vld [vmem:[#allocation8 + $0x238] sm:$0xff] }
 0x187   :  { %1168 = vmatprep.subr.mxu0 %v461_v53  ;;  %1239 = vmatprep.subr.mxu1 %v717_v54  ;;  %v607_v53 = vld [vmem:[#allocation8 + $0xa38] sm:$0xff]  ;;  %v350_v54 = vld [vmem:[#allocation8 + $0x230] sm:$0xff] }
 0x188   :  { %1169 = vmatpush2.msra.mxu0 %v460_v55  ;;  %1240 = vmatpush2.msra.mxu1 %v716_v56  ;;  %v606_v55 = vld [vmem:[#allocation8 + $0xa30] sm:$0xff]  ;;  %v343_v56 = vld [vmem:[#allocation8 + $0x1f8] sm:$0xff] }
 0x189   :  { %1170 = vmatprep.subr.mxu0 %v453_v57  ;;  %1241 = vmatprep.subr.mxu1 %v709_v58  ;;  %v599_v57 = vld [vmem:[#allocation8 + $0x9f8] sm:$0xff]  ;;  %v342_v58 = vld [vmem:[#allocation8 + $0x1f0] sm:$0xff] }
 0x18a   :  { %1171 = vmatpush2.msra.mxu0 %v452_v59  ;;  %1242 = vmatpush2.msra.mxu1 %v708_v60  ;;  %v598_v59 = vld [vmem:[#allocation8 + $0x9f0] sm:$0xff]  ;;  %v335_v60 = vld [vmem:[#allocation8 + $0x1b8] sm:$0xff] }
 0x18b   :  { %1172 = vmatprep.subr.mxu0 %v445_v61  ;;  %1243 = vmatprep.subr.mxu1 %v701_v62  ;;  %v591_v61 = vld [vmem:[#allocation8 + $0x9b8] sm:$0xff]  ;;  %v334_v62 = vld [vmem:[#allocation8 + $0x1b0] sm:$0xff] }
 0x18c   :  { %1173 = vmatpush2.msra.mxu0 %v444_v63  ;;  %1244 = vmatpush2.msra.mxu1 %v700_v0  ;;  %v590_v63 = vld [vmem:[#allocation8 + $0x9b0] sm:$0xff]  ;;  %v327_v0 = vld [vmem:[#allocation8 + $0x178] sm:$0xff] }
 0x18d   :  { %1174 = vmatprep.subr.mxu0 %v437_v1  ;;  %1245 = vmatprep.subr.mxu1 %v693_v2  ;;  %v583_v1 = vld [vmem:[#allocation8 + $0x978] sm:$0xff]  ;;  %v326_v2 = vld [vmem:[#allocation8 + $0x170] sm:$0xff] }
 0x18e   :  { %1175 = vmatpush2.msra.mxu0 %v436_v3  ;;  %1246 = vmatpush2.msra.mxu1 %v692_v4  ;;  %v582_v3 = vld [vmem:[#allocation8 + $0x970] sm:$0xff]  ;;  %v319_v4 = vld [vmem:[#allocation8 + $0x138] sm:$0xff] }
 0x18f   :  { %1176 = vmatprep.subr.mxu0 %v429_v5  ;;  %1247 = vmatprep.subr.mxu1 %v685_v6  ;;  %v575_v5 = vld [vmem:[#allocation8 + $0x938] sm:$0xff]  ;;  %v318_v6 = vld [vmem:[#allocation8 + $0x130] sm:$0xff] }
 0x190   :  { %1177 = vmatpush2.msra.mxu0 %v428_v7  ;;  %1248 = vmatpush2.msra.mxu1 %v684_v8  ;;  %v574_v7 = vld [vmem:[#allocation8 + $0x930] sm:$0xff]  ;;  %v311_v8 = vld [vmem:[#allocation8 + $0xf8] sm:$0xff] }
 0x191   :  { %1178 = vmatprep.subr.mxu0 %v421_v9  ;;  %1249 = vmatprep.subr.mxu1 %v677_v10  ;;  %v567_v9 = vld [vmem:[#allocation8 + $0x8f8] sm:$0xff]  ;;  %v310_v10 = vld [vmem:[#allocation8 + $0xf0] sm:$0xff] }
 0x192   :  { %1179 = vmatpush2.msra.mxu0 %v420_v11  ;;  %1250 = vmatpush2.msra.mxu1 %v676_v12  ;;  %v566_v11 = vld [vmem:[#allocation8 + $0x8f0] sm:$0xff]  ;;  %v303_v12 = vld [vmem:[#allocation8 + $0xb8] sm:$0xff] }
 0x193   :  { %1180 = vmatprep.subr.mxu0 %v413_v13  ;;  %1251 = vmatprep.subr.mxu1 %v669_v14  ;;  %v559_v13 = vld [vmem:[#allocation8 + $0x8b8] sm:$0xff]  ;;  %v302_v14 = vld [vmem:[#allocation8 + $0xb0] sm:$0xff] }
 0x194   :  { %1181 = vmatpush2.msra.mxu0 %v412_v15  ;;  %1252 = vmatpush2.msra.mxu1 %v668_v16  ;;  %v558_v15 = vld [vmem:[#allocation8 + $0x8b0] sm:$0xff]  ;;  %v295_v16 = vld [vmem:[#allocation8 + $0x78] sm:$0xff] }
 0x195   :  { %1183 = vmatmul.mubr.f32.vlgmr.msra.gmra.mxu0 %v1733_v47  ;;  %1254 = vmatmul.mubr.f32.vlgmr.msra.gmra.mxu1 %v1735_v48 }
 0x196   :  { %1260 = vmatprep.subr.mxu0 %v407_v17  ;;  %1331 = vmatprep.subr.mxu1 %v663_v18  ;;  %v551_v17 = vld [vmem:[#allocation8 + $0x878] sm:$0xff]  ;;  %v294_v18 = vld [vmem:[#allocation8 + $0x70] sm:$0xff] }
 0x197   :  { %1261 = vmatpush1.msra.mxu0 %v406_v19  ;;  %1324 = vmatprep.mubr.f32.mxu0 %v1727_v43  ;;  %v375_v43 = vld [vmem:[#allocation8 + $0x2f8] sm:$0xff]  ;;  %v550_v19 = vld [vmem:[#allocation8 + $0x870] sm:$0xff] }
 0x198   :  { %1332 = vmatpush1.msra.mxu1 %v662_v20  ;;  %1395 = vmatprep.mubr.f32.mxu1 %v1729_v44  ;;  %v374_v44 = vld [vmem:[#allocation8 + $0x2f0] sm:$0xff]  ;;  %v287_v20 = vld [vmem:[#allocation8 + $0x38] sm:$0xff] }
 0x199   :  { %1262 = vmatprep.subr.mxu0 %v399_v24  ;;  %1333 = vmatprep.subr.mxu1 %v655_v27  ;;  %v543_v24 = vld [vmem:[#allocation8 + $0x838] sm:$0xff]  ;;  %v286_v27 = vld [vmem:[#allocation8 + $0x30] sm:$0xff] }
 0x19a   :  { %1263 = vmatpush1.msra.mxu0 %v398_v28  ;;  %1334 = vmatpush1.msra.mxu1 %v654_v29  ;;  %v542_v28 = vld [vmem:[#allocation8 + $0x830] sm:$0xff]  ;;  %v535_v29 = vld [vmem:[#allocation8 + $0x7f8] sm:$0xff] }
 0x19b   :  { %1264 = vmatprep.subr.mxu0 %v391_v30  ;;  %1335 = vmatprep.subr.mxu1 %v647_v31  ;;  %v791_v30 = vld [vmem:[#allocation8 + $0xff8] sm:$0xff]  ;;  %v534_v31 = vld [vmem:[#allocation8 + $0x7f0] sm:$0xff] }
 0x19c   :  { %1265 = vmatpush1.msra.mxu0 %v390_v32  ;;  %1336 = vmatpush1.msra.mxu1 %v646_v33  ;;  %v790_v32 = vld [vmem:[#allocation8 + $0xff0] sm:$0xff]  ;;  %v527_v33 = vld [vmem:[#allocation8 + $0x7b8] sm:$0xff] }
 0x19d   :  { %1266 = vmatprep.subr.mxu0 %v383_v34  ;;  %1337 = vmatprep.subr.mxu1 %v639_v35  ;;  %v783_v34 = vld [vmem:[#allocation8 + $0xfb8] sm:$0xff]  ;;  %v526_v35 = vld [vmem:[#allocation8 + $0x7b0] sm:$0xff] }
 0x19e   :  { %1267 = vmatpush1.msra.mxu0 %v382_v36  ;;  %1338 = vmatpush1.msra.mxu1 %v638_v37  ;;  %v782_v36 = vld [vmem:[#allocation8 + $0xfb0] sm:$0xff]  ;;  %v519_v37 = vld [vmem:[#allocation8 + $0x778] sm:$0xff] }
 0x19f   :  { %1268 = vmatprep.subr.mxu0 %v375_v43  ;;  %1339 = vmatprep.subr.mxu1 %v631_v38  ;;  %v775_v43 = vld [vmem:[#allocation8 + $0xf78] sm:$0xff]  ;;  %v518_v38 = vld [vmem:[#allocation8 + $0x770] sm:$0xff] }
 0x1a0   :  { %1269 = vmatpush1.msra.mxu0 %v374_v44  ;;  %1340 = vmatpush1.msra.mxu1 %v630_v39  ;;  %v774_v44 = vld [vmem:[#allocation8 + $0xf70] sm:$0xff]  ;;  %v511_v39 = vld [vmem:[#allocation8 + $0x738] sm:$0xff] }
 0x1a1   :  { %1270 = vmatprep.subr.mxu0 %v367_v40  ;;  %1341 = vmatprep.subr.mxu1 %v623_v41  ;;  %v767_v40 = vld [vmem:[#allocation8 + $0xf38] sm:$0xff]  ;;  %v510_v41 = vld [vmem:[#allocation8 + $0x730] sm:$0xff] }
 0x1a2   :  { %1271 = vmatpush1.msra.mxu0 %v366_v42  ;;  %1342 = vmatpush1.msra.mxu1 %v622_v45  ;;  %v766_v42 = vld [vmem:[#allocation8 + $0xf30] sm:$0xff]  ;;  %v503_v45 = vld [vmem:[#allocation8 + $0x6f8] sm:$0xff] }
 0x1a3   :  { %1272 = vmatprep.subr.mxu0 %v359_v46  ;;  %1343 = vmatprep.subr.mxu1 %v615_v49  ;;  %v759_v46 = vld [vmem:[#allocation8 + $0xef8] sm:$0xff]  ;;  %v502_v49 = vld [vmem:[#allocation8 + $0x6f0] sm:$0xff] }
 0x1a4   :  { %1273 = vmatpush1.msra.mxu0 %v358_v50  ;;  %1344 = vmatpush1.msra.mxu1 %v614_v51  ;;  %v758_v50 = vld [vmem:[#allocation8 + $0xef0] sm:$0xff]  ;;  %v495_v51 = vld [vmem:[#allocation8 + $0x6b8] sm:$0xff] }
 0x1a5   :  { %1274 = vmatprep.subr.mxu0 %v351_v52  ;;  %1345 = vmatprep.subr.mxu1 %v607_v53  ;;  %v751_v52 = vld [vmem:[#allocation8 + $0xeb8] sm:$0xff]  ;;  %v494_v53 = vld [vmem:[#allocation8 + $0x6b0] sm:$0xff] }
 0x1a6   :  { %1275 = vmatpush1.msra.mxu0 %v350_v54  ;;  %1346 = vmatpush1.msra.mxu1 %v606_v55  ;;  %v750_v54 = vld [vmem:[#allocation8 + $0xeb0] sm:$0xff]  ;;  %v487_v55 = vld [vmem:[#allocation8 + $0x678] sm:$0xff] }
 0x1a7   :  { %1276 = vmatprep.subr.mxu0 %v343_v56  ;;  %1347 = vmatprep.subr.mxu1 %v599_v57  ;;  %v743_v56 = vld [vmem:[#allocation8 + $0xe78] sm:$0xff]  ;;  %v486_v57 = vld [vmem:[#allocation8 + $0x670] sm:$0xff] }
 0x1a8   :  { %1277 = vmatpush1.msra.mxu0 %v342_v58  ;;  %1348 = vmatpush1.msra.mxu1 %v598_v59  ;;  %v742_v58 = vld [vmem:[#allocation8 + $0xe70] sm:$0xff]  ;;  %v479_v59 = vld [vmem:[#allocation8 + $0x638] sm:$0xff] }
 0x1a9   :  { %1278 = vmatprep.subr.mxu0 %v335_v60  ;;  %1349 = vmatprep.subr.mxu1 %v591_v61  ;;  %v735_v60 = vld [vmem:[#allocation8 + $0xe38] sm:$0xff]  ;;  %v478_v61 = vld [vmem:[#allocation8 + $0x630] sm:$0xff] }
 0x1aa   :  { %1279 = vmatpush1.msra.mxu0 %v334_v62  ;;  %1350 = vmatpush1.msra.mxu1 %v590_v63  ;;  %v734_v62 = vld [vmem:[#allocation8 + $0xe30] sm:$0xff]  ;;  %v471_v63 = vld [vmem:[#allocation8 + $0x5f8] sm:$0xff] }
 0x1ab   :  { %1280 = vmatprep.subr.mxu0 %v327_v0  ;;  %1351 = vmatprep.subr.mxu1 %v583_v1  ;;  %v727_v0 = vld [vmem:[#allocation8 + $0xdf8] sm:$0xff]  ;;  %v470_v1 = vld [vmem:[#allocation8 + $0x5f0] sm:$0xff] }
 0x1ac   :  { %1281 = vmatpush1.msra.mxu0 %v326_v2  ;;  %1352 = vmatpush1.msra.mxu1 %v582_v3  ;;  %v726_v2 = vld [vmem:[#allocation8 + $0xdf0] sm:$0xff]  ;;  %v463_v3 = vld [vmem:[#allocation8 + $0x5b8] sm:$0xff] }
 0x1ad   :  { %1282 = vmatprep.subr.mxu0 %v319_v4  ;;  %1353 = vmatprep.subr.mxu1 %v575_v5  ;;  %v719_v4 = vld [vmem:[#allocation8 + $0xdb8] sm:$0xff]  ;;  %v462_v5 = vld [vmem:[#allocation8 + $0x5b0] sm:$0xff] }
 0x1ae   :  { %1283 = vmatpush1.msra.mxu0 %v318_v6  ;;  %1354 = vmatpush1.msra.mxu1 %v574_v7  ;;  %v718_v6 = vld [vmem:[#allocation8 + $0xdb0] sm:$0xff]  ;;  %v455_v7 = vld [vmem:[#allocation8 + $0x578] sm:$0xff] }
 0x1af   :  { %1284 = vmatprep.subr.mxu0 %v311_v8  ;;  %1355 = vmatprep.subr.mxu1 %v567_v9  ;;  %v711_v8 = vld [vmem:[#allocation8 + $0xd78] sm:$0xff]  ;;  %v454_v9 = vld [vmem:[#allocation8 + $0x570] sm:$0xff] }
 0x1b0   :  { %1285 = vmatpush1.msra.mxu0 %v310_v10  ;;  %1356 = vmatpush1.msra.mxu1 %v566_v11  ;;  %v710_v10 = vld [vmem:[#allocation8 + $0xd70] sm:$0xff]  ;;  %v447_v11 = vld [vmem:[#allocation8 + $0x538] sm:$0xff] }
 0x1b1   :  { %1286 = vmatprep.subr.mxu0 %v303_v12  ;;  %1357 = vmatprep.subr.mxu1 %v559_v13  ;;  %v703_v12 = vld [vmem:[#allocation8 + $0xd38] sm:$0xff]  ;;  %v446_v13 = vld [vmem:[#allocation8 + $0x530] sm:$0xff] }
 0x1b2   :  { %1287 = vmatpush1.msra.mxu0 %v302_v14  ;;  %1358 = vmatpush1.msra.mxu1 %v558_v15  ;;  %v702_v14 = vld [vmem:[#allocation8 + $0xd30] sm:$0xff]  ;;  %v439_v15 = vld [vmem:[#allocation8 + $0x4f8] sm:$0xff] }
 0x1b3   :  { %1288 = vmatprep.subr.mxu0 %v295_v16  ;;  %1359 = vmatprep.subr.mxu1 %v551_v17  ;;  %v695_v16 = vld [vmem:[#allocation8 + $0xcf8] sm:$0xff]  ;;  %v438_v17 = vld [vmem:[#allocation8 + $0x4f0] sm:$0xff] }
 0x1b4   :  { %1289 = vmatpush1.msra.mxu0 %v294_v18  ;;  %1360 = vmatpush1.msra.mxu1 %v550_v19  ;;  %v694_v18 = vld [vmem:[#allocation8 + $0xcf0] sm:$0xff]  ;;  %v431_v19 = vld [vmem:[#allocation8 + $0x4b8] sm:$0xff] }
 0x1b5   :  { %1290 = vmatprep.subr.mxu0 %v287_v20  ;;  %1361 = vmatprep.subr.mxu1 %v543_v24  ;;  %v687_v20 = vld [vmem:[#allocation8 + $0xcb8] sm:$0xff]  ;;  %v430_v24 = vld [vmem:[#allocation8 + $0x4b0] sm:$0xff] }
 0x1b6   :  { %1291 = vmatpush1.msra.mxu0 %v286_v27  ;;  %1362 = vmatpush1.msra.mxu1 %v542_v28  ;;  %v686_v27 = vld [vmem:[#allocation8 + $0xcb0] sm:$0xff]  ;;  %v423_v28 = vld [vmem:[#allocation8 + $0x478] sm:$0xff] }
 0x1b7   :  { %1292 = vmatprep.subr.mxu0 %v535_v29  ;;  %1363 = vmatprep.subr.mxu1 %v791_v30  ;;  %v679_v29 = vld [vmem:[#allocation8 + $0xc78] sm:$0xff]  ;;  %v422_v30 = vld [vmem:[#allocation8 + $0x470] sm:$0xff] }
 0x1b8   :  { %1293 = vmatpush2.msra.mxu0 %v534_v31  ;;  %1364 = vmatpush2.msra.mxu1 %v790_v32  ;;  %v678_v31 = vld [vmem:[#allocation8 + $0xc70] sm:$0xff]  ;;  %v415_v32 = vld [vmem:[#allocation8 + $0x438] sm:$0xff] }
 0x1b9   :  { %1294 = vmatprep.subr.mxu0 %v527_v33  ;;  %1365 = vmatprep.subr.mxu1 %v783_v34  ;;  %v671_v33 = vld [vmem:[#allocation8 + $0xc38] sm:$0xff]  ;;  %v414_v34 = vld [vmem:[#allocation8 + $0x430] sm:$0xff] }
 0x1ba   :  { %1295 = vmatpush2.msra.mxu0 %v526_v35  ;;  %1366 = vmatpush2.msra.mxu1 %v782_v36  ;;  %v670_v35 = vld [vmem:[#allocation8 + $0xc30] sm:$0xff] }
 0x1bb   :  { %1296 = vmatprep.subr.mxu0 %v519_v37  ;;  %1367 = vmatprep.subr.mxu1 %v775_v43 }
 0x1bc   :  { %1297 = vmatpush2.msra.mxu0 %v518_v38  ;;  %1368 = vmatpush2.msra.mxu1 %v774_v44  ;;  %v792_v44 = vld [vmem:[#allocation10] sm:$0xff] }
 0x1bd   :  { %1298 = vmatprep.subr.mxu0 %v511_v39  ;;  %1369 = vmatprep.subr.mxu1 %v767_v40 }
 0x1be   :  { %1299 = vmatpush2.msra.mxu0 %v510_v41  ;;  %1370 = vmatpush2.msra.mxu1 %v766_v42  ;;  %v809_v41 = vrot.slane %v792_v44, %v116_v26  ;;  %v816_v42 = vsub.s32 5, %v1713_v21 }
 0x1bf   :  { %1300 = vmatprep.subr.mxu0 %v503_v45  ;;  %1371 = vmatprep.subr.mxu1 %v759_v46  ;;  %v801_v45 = vrot.slane %v792_v44, %v108_v25 }
 0x1c0   :  { %1301 = vmatpush2.msra.mxu0 %v502_v49  ;;  %1372 = vmatpush2.msra.mxu1 %v758_v50  ;;  %v797_v50 = vrot.slane %v792_v44, %v104_v22 }
 0x1c1   :  { %1302 = vmatprep.subr.mxu0 %v495_v51  ;;  %1373 = vmatprep.subr.mxu1 %v751_v52  ;;  %v817_v52 = vrot.slane %v792_v44, %v816_v42 }
 0x1c2   :  { %1303 = vmatpush2.msra.mxu0 %v494_v53  ;;  %1374 = vmatpush2.msra.mxu1 %v750_v54 }
 0x1c3   :  { %1304 = vmatprep.subr.mxu0 %v487_v55  ;;  %1375 = vmatprep.subr.mxu1 %v743_v56 }
 0x1c4   :  { %1305 = vmatpush2.msra.mxu0 %v486_v57  ;;  %1376 = vmatpush2.msra.mxu1 %v742_v58 }
 0x1c5   :  { %1306 = vmatprep.subr.mxu0 %v479_v59  ;;  %1377 = vmatprep.subr.mxu1 %v735_v60  ;;  %v820_v60 = vsub.s32 6, %v1713_v21 }
 0x1c6   :  { %1307 = vmatpush2.msra.mxu0 %v478_v61  ;;  %1378 = vmatpush2.msra.mxu1 %v734_v62 }
 0x1c7   :  { %1308 = vmatprep.subr.mxu0 %v471_v63  ;;  %1379 = vmatprep.subr.mxu1 %v727_v0  ;;  %v824_v63 = vsub.s32 7, %v1713_v21 }
 0x1c8   :  { %1309 = vmatpush2.msra.mxu0 %v470_v1  ;;  %1380 = vmatpush2.msra.mxu1 %v726_v2 }
 0x1c9   :  { %1310 = vmatprep.subr.mxu0 %v463_v3  ;;  %1381 = vmatprep.subr.mxu1 %v719_v4  ;;  %v821_v3 = vrot.slane %v792_v44, %v820_v60 }
 0x1ca   :  { %1311 = vmatpush2.msra.mxu0 %v462_v5  ;;  %1382 = vmatpush2.msra.mxu1 %v718_v6  ;;  %v1666_v5 = vmov 1966171168  }
 0x1cb   :  { %1312 = vmatprep.subr.mxu0 %v455_v7  ;;  %1383 = vmatprep.subr.mxu1 %v711_v8  ;;  %v1447_v6 = vunpack.c.l.s4 %v1666_v5 }
 0x1cc   :  { %1313 = vmatpush2.msra.mxu0 %v454_v9  ;;  %1384 = vmatpush2.msra.mxu1 %v710_v10  ;;  %v825_v9 = vrot.slane %v792_v44, %v824_v63 }
 0x1cd   :  { %1314 = vmatprep.subr.mxu0 %v447_v11  ;;  %1385 = vmatprep.subr.mxu1 %v703_v12 }
 0x1ce   :  { %1315 = vmatpush2.msra.mxu0 %v446_v13  ;;  %1386 = vmatpush2.msra.mxu1 %v702_v14 }
 0x1cf   :  { %1316 = vmatprep.subr.mxu0 %v439_v15  ;;  %1387 = vmatprep.subr.mxu1 %v695_v16 }
 0x1d0   :  { %1317 = vmatpush2.msra.mxu0 %v438_v17  ;;  %1388 = vmatpush2.msra.mxu1 %v694_v18  ;;  %v1448_v17 = vunpack.c.0.s8 %v1447_v6 }
 0x1d1   :  { %1318 = vmatprep.subr.mxu0 %v431_v19  ;;  %1389 = vmatprep.subr.mxu1 %v687_v20 }
 0x1d2   :  { %1319 = vmatpush2.msra.mxu0 %v430_v24  ;;  %1390 = vmatpush2.msra.mxu1 %v686_v27  ;;  %v900_v36 = vpop.f32.mrf.mxu0  ;;  %v971_v43 = vpop.f32.mrf.mxu1 }
 0x1d3   :  { %1320 = vmatprep.subr.mxu0 %v423_v28  ;;  %1391 = vmatprep.subr.mxu1 %v679_v29  ;;  %v901_v58 = vadd.f32 %v900_v36, %v797_v50 }
 0x1d4   :  { %1321 = vmatpush2.msra.mxu0 %v422_v30  ;;  %1392 = vmatpush2.msra.mxu1 %v678_v31  ;;  %v902_v37 = vpop.f32.mrf.mxu0  ;;  %v973_v39 = vpop.f32.mrf.mxu1 }
 0x1d5   :  { %1322 = vmatprep.subr.mxu0 %v415_v32  ;;  %1393 = vmatprep.subr.mxu1 %v671_v33  ;;  %v903_v53 = vadd.f32 %v902_v37, %v801_v45  ;;  %v972_v22 = vadd.f32 %v971_v43, %v901_v58 }
 0x1d6   :  { %1323 = vmatpush2.msra.mxu0 %v414_v34  ;;  %1394 = vmatpush2.msra.mxu1 %v670_v35  ;;  %v1451_v35 = vsub.s32 %v1448_v17, %v1713_v21 }
 0x1d7   :  { %1325 = vmatmul.mubr.f32.vlgmr.msra.gmra.mxu0 %v1733_v47  ;;  %1396 = vmatmul.mubr.f32.vlgmr.msra.gmra.mxu1 %v1735_v48  ;;  %v805_v47 = vrot.slane %v792_v44, %v112_v23  ;;  %v812_v48 = vsub.s32 4, %v1713_v21  ;;  %v974_v61 = vadd.f32 %v973_v39, %v903_v53  ;;  %v1410_v12 = vmul.f32 0.01, %v972_v22 }
 0x1d8   :  { %vm1402_vm8 = vcmp.gt.f32.partialorder %v972_v22, 0.0 }
 0x1d9   :  { %v813_v56 = vrot.slane %v792_v44, %v812_v48  ;;  %v1411_v4 = vmul.f32 0.01, %v974_v61  ;;  %vm1403_vm6 = vcmp.gt.f32.partialorder %v974_v61, 0.0  ;;  %v1418_v30 = vsel %vm1402_vm8, %v972_v22, %v1410_v12 }
 0x1db   :  { %v1419_v16 = vsel %vm1403_vm6, %v974_v61, %v1411_v4 }
 0x1dc   :  { %v1512_v34 = vpack.c.bf16 %v1419_v16, %v1418_v30 }
 0x213   :  { %v1042_v38 = vpop.f32.mrf.mxu0  ;;  %v1113_v46 = vpop.f32.mrf.mxu1 }
 0x214   :  { %v1043_v55 = vadd.f32 %v1042_v38, %v805_v47 }
 0x215   :  { %v1044_v40 = vpop.f32.mrf.mxu0  ;;  %v1115_v54 = vpop.f32.mrf.mxu1 }
 0x216   :  { %v1045_v51 = vadd.f32 %v1044_v40, %v809_v41  ;;  %v1114_v23 = vadd.f32 %v1113_v46, %v1043_v55  ;;  %v1452_v40 = vrot.slane %v1512_v34, %v1451_v35 }
 0x218   :  { %v1116_v25 = vadd.f32 %v1115_v54, %v1045_v51  ;;  %v1412_v7 = vmul.f32 0.01, %v1114_v23  ;;  %vm1404_vm7 = vcmp.gt.f32.partialorder %v1114_v23, 0.0 }
 0x21a   :  { %v1413_v1 = vmul.f32 0.01, %v1116_v25  ;;  %vm1405_vm5 = vcmp.gt.f32.partialorder %v1116_v25, 0.0  ;;  %v1420_v19 = vsel %vm1404_vm7, %v1114_v23, %v1412_v7 }
 0x21c   :  { %v1421_v13 = vsel %vm1405_vm5, %v1116_v25, %v1413_v1 }
 0x21d   :  { %v1513_v28 = vpack.c.bf16 %v1421_v13, %v1420_v19 }
 0x21f   :  { %v1459_v43 = vrot.slane %v1513_v28, %v1451_v35 }
 0x221   :  { %v1474_v46 = vcombine.low %v1452_v40, %v1459_v43 }
 0x223   :  { %v1482_v47 = vrot.slane %v1474_v46, %v1451_v35 }
 0x255   :  { %v1184_v49 = vpop.f32.mrf.mxu0  ;;  %v1255_v57 = vpop.f32.mrf.mxu1 }
 0x256   :  { %v1185_v62 = vadd.f32 %v1184_v49, %v813_v56 }
 0x257   :  { %v1186_v26 = vpop.f32.mrf.mxu0  ;;  %v1257_v0 = vpop.f32.mrf.mxu1 }
 0x258   :  { %v1187_v59 = vadd.f32 %v1186_v26, %v817_v52  ;;  %v1256_v8 = vadd.f32 %v1255_v57, %v1185_v62 }
 0x25a   :  { %v1258_v2 = vadd.f32 %v1257_v0, %v1187_v59  ;;  %v1414_v20 = vmul.f32 0.01, %v1256_v8  ;;  %vm1406_vm10 = vcmp.gt.f32.partialorder %v1256_v8, 0.0 }
 0x25c   :  { %v1415_v14 = vmul.f32 0.01, %v1258_v2  ;;  %vm1407_vm9 = vcmp.gt.f32.partialorder %v1258_v2, 0.0  ;;  %v1422_v36 = vsel %vm1406_vm10, %v1256_v8, %v1414_v20 }
 0x25e   :  { %v1423_v31 = vsel %vm1407_vm9, %v1258_v2, %v1415_v14 }
 0x25f   :  { %v1514_v38 = vpack.c.bf16 %v1423_v31, %v1422_v36 }
 0x261   :  { %v1466_v42 = vrot.slane %v1514_v38, %v1451_v35 }
 0x297   :  { %v1326_v10 = vpop.f32.mrf.mxu0  ;;  %v1397_v11 = vpop.f32.mrf.mxu1 }
 0x298   :  { %v1327_v15 = vadd.f32 %v1326_v10, %v821_v3 }
 0x299   :  { %v1328_v18 = vpop.f32.mrf.mxu0  ;;  %v1399_v29 = vpop.f32.mrf.mxu1 }
 0x29a   :  { %v1398_v24 = vadd.f32 %v1397_v11, %v1327_v15  ;;  %v1329_v27 = vadd.f32 %v1328_v18, %v825_v9 }
 0x29c   :  { %v1416_v32 = vmul.f32 0.01, %v1398_v24  ;;  %v1400_v33 = vadd.f32 %v1399_v29, %v1329_v27  ;;  %vm1408_vm11 = vcmp.gt.f32.partialorder %v1398_v24, 0.0 }
 0x29e   :  { %vm1409_vm12 = vcmp.gt.f32.partialorder %v1400_v33, 0.0  ;;  %v1417_v37 = vmul.f32 0.01, %v1400_v33  ;;  %v1424_v44 = vsel %vm1408_vm11, %v1398_v24, %v1416_v32 }
 0x2a0   :  { %v1425_v39 = vsel %vm1409_vm12, %v1400_v33, %v1417_v37 }
 0x2a1   :  { %v1515_v41 = vpack.c.bf16 %v1425_v39, %v1424_v44 }
 0x2a3   :  { %v1473_v45 = vrot.slane %v1515_v41, %v1451_v35 }
 0x2a5   :  { %v1475_v49 = vcombine.low %v1466_v42, %v1473_v45 }
 0x2a7   :  { %v1489_v48 = vrot.slane %v1475_v49, %v1451_v35 }
 0x2a9   :  { %v1490_v50 = vcombine.low %v1482_v47, %v1489_v48 }
 0x2ab   :  { %1492 = vst [vmem:[#allocation11] sm:$0xff] %v1490_v50 }
 0x2ac   :  { %1639 = shalt.err (!%p1636_p1)
}
 0x2ad   :  { %1502 = dma.vmem_to_hbm [thread:$0]  %s1500_s4, 128, %s1772_s5, [#allocation4]  }
 0x2ae   :  { %1654 = dma.done.wait [#allocation4], 128  }
 0x2af   :  { %1655 = vsyncadd [#allocation4], 4294967168 }
 0x2b0   :  { %1506 = vsyncpa [#allocation3], 1 }
 0x2b1   :  { %1507 = vsyncpa [#allocation6], 1 }
 0x2b2   :  { %1508 = vsyncpa [#allocation9], 1 }
 0x2b3   :  { %1509 = vsyncpa [#allocation4], 1 }

</bundles_post_ra>
